<compile_context>
chip_gen: v7x
topology: tpu7x:2x2x1
jax: 0.10.0
libtpu: 0.0.40
codegen_flags: <defaults>
</compile_context>

<pallas_src>
import functools

import jax
import jax.numpy as jnp
from jax import lax
from jax.experimental import pallas as pl
from jax.experimental.pallas import tpu as pltpu


# ----------------------------------------------------------------------------- helpers

def _shift_union(k, s, p):
    """Sorted union over output phases of valid input shifts d (kernel tap kh = a+p-s*d)."""
    shifts = set()
    for a in range(s):
        for kh in range(k):
            if (a + p - kh) % s == 0:
                shifts.add((a + p - kh) // s)
    return tuple(sorted(shifts))


def _choose_tile_h(H, row_bytes, requested=None, target_bytes=4 << 20):
    """Pick an H tile that divides H; multiples of 8 preferred (sublane alignment)."""
    if requested is not None:
        assert H % requested == 0 and (requested % 8 == 0 or requested == H), (
            "tile_h must divide H and be a multiple of 8 (or equal to H)")
        return requested
    if H % 8 != 0:
        return H                                   # full-dim blocks are always legal
    divisors = [d for d in range(8, H + 1, 8) if H % d == 0]
    fitting = [d for d in divisors if d * row_bytes <= target_bytes]
    return max(fitting) if fitting else min(divisors)


def _build_phase_weights(w_kkio, k, s, p, Dh, Dw, dtype):
    """(s, |Dh|*|Dw|*Cin, s*Cout) tap-folded weight matrices, one per output row phase."""
    Cin, Cout = w_kkio.shape[2], w_kkio.shape[3]
    zeros = jnp.zeros((Cin, Cout), w_kkio.dtype)
    phases = []
    for a in range(s):
        rows = []
        for dh in Dh:
            kh = a + p - s * dh
            for dw in Dw:
                cols = []
                for b in range(s):
                    kw = b + p - s * dw
                    if 0 <= kh < k and 0 <= kw < k:
                        cols.append(w_kkio[kh, kw])           # (Cin, Cout)
                    else:
                        cols.append(zeros)
                rows.append(jnp.concatenate(cols, axis=1))    # (Cin, s*Cout)
        phases.append(jnp.concatenate(rows, axis=0))          # (Kfold, s*Cout)
    return jnp.stack(phases, axis=0).astype(dtype)            # (s, Kfold, s*Cout)


# ----------------------------------------------------------------------------- kernels

def _make_deconv_kernel(*, W, Cin, Cout, s, Dh, Dw, pad_lo, tile_h,
                        apply_relu, emit_stats):
    k_fold = len(Dh) * len(Dw) * Cin
    sc = s * Cout

    def kernel(x_ref, w_ref, b_ref, *out_refs):
        if emit_stats:
            o_ref, sum_ref, sq_ref = out_refs
        else:
            (o_ref,) = out_refs

        t = pl.program_id(1)
        h_base = t * tile_h
        if tile_h % 8 == 0:
            h_base = pl.multiple_of(h_base, 8)

        # im2col gather shared by all row phases: (tile_h*W, Kfold)
        pieces = []
        for dh in Dh:
            xrow = x_ref[0, pl.ds(h_base + pad_lo + dh, tile_h), :, :]   # (tile_h, Wp, Cin)
            for dw in Dw:
                c0 = pad_lo + dw
                pieces.append(xrow[:, c0:c0 + W, :])                     # (tile_h, W, Cin)
        xcat = jnp.concatenate(pieces, axis=-1)                          # (tile_h, W, Kfold)
        xcat = xcat.reshape(tile_h * W, k_fold)

        bias = b_ref[...].astype(jnp.float32)                            # (1, s*Cout)
        if emit_stats:
            csum = jnp.zeros((1, sc), jnp.float32)
            csq = jnp.zeros((1, sc), jnp.float32)

        for a in range(s):
            # one tap-folded MXU matmul per output row phase, f32 accumulation
            y = jnp.dot(xcat, w_ref[a],
                        preferred_element_type=jnp.float32) + bias       # (tile_h*W, s*Cout)
            if apply_relu:
                y = jnp.maximum(y, 0.0)
            if emit_stats:
                csum = csum + jnp.sum(y, axis=0, keepdims=True)
                csq = csq + jnp.sum(y * y, axis=0, keepdims=True)
            # direct interleaved store: value (h, w, b*Cout+c) lands at (h, a, w, b*Cout+c)
            o_ref[0, :, a, :, :] = y.reshape(tile_h, W, sc).astype(o_ref.dtype)

        if emit_stats:
            sum_ref[0, 0] = jnp.sum(csum.reshape(s, Cout), axis=0, keepdims=True)
            sq_ref[0, 0] = jnp.sum(csq.reshape(s, Cout), axis=0, keepdims=True)

    return kernel


def _bn_relu_kernel(y_ref, scale_ref, shift_ref, o_ref):
    y = y_ref[0].astype(jnp.float32)                    # (tile_h, s, W, s*Cout)
    o_ref[0] = jnp.maximum(
        y * scale_ref[...] + shift_ref[...], 0.0).astype(o_ref.dtype)


# ----------------------------------------------------------------------------- wrapper

def transposed_cnn_block_2d(x_nchw, weight, bias, *, kernel_size, up_sample=2,
                            use_batch_norm=False, bn_gamma=None, bn_beta=None,
                            eps=1e-5, tile_h=None):
    """Forward pass of TransposedCNNBlock2d.

    x_nchw : (N, Cin, H, W)    weight : (Cin, Cout, k, k)  (PyTorch ConvTranspose2d layout)
    bias   : (Cout,)           returns: (N, Cout, H*s, W*s)
    """
    N, Cin, H, W = x_nchw.shape
    k, s = kernel_size, up_sample
    assert (k - s) % 2 == 0, "requires (kernel_size - up_sample) even (integer padding)"
    p = (k - s) // 2
    Cout = weight.shape[1]
    H_out, W_out = H * s, W * s
    sc = s * Cout

    Dh = _shift_union(k, s, p)                    # same union applies to H and W
    pad_lo = max(0, -min(Dh))
    pad_hi = max(0, max(Dh))
    Hp, Wp = H + pad_lo + pad_hi, W + pad_lo + pad_hi

    # glue: NCHW -> NHWC, zero-pad so in-kernel tap shifts are plain in-bounds slices.
    # TODO(synk): fold the pad/transpose into the kernel (pl.when-masked boundary taps).
    x_nhwc = jnp.transpose(x_nchw, (0, 2, 3, 1))
    x_pad = jnp.pad(x_nhwc, ((0, 0), (pad_lo, pad_hi), (pad_lo, pad_hi), (0, 0)))

    w_kkio = jnp.transpose(weight, (2, 3, 0, 1)).astype(x_nchw.dtype)    # (k,k,Cin,Cout)
    wmat = _build_phase_weights(w_kkio, k, s, p, Dh, Dh, x_nchw.dtype)   # (s,Kfold,sc)
    k_fold = wmat.shape[1]
    bias_t = jnp.tile(bias.astype(jnp.float32), (s,)).reshape(1, sc)

    interm_dtype = jnp.float32 if use_batch_norm else x_nchw.dtype
    row_bytes = s * W * sc * jnp.dtype(interm_dtype).itemsize
    tile_h = _choose_tile_h(H, row_bytes, tile_h)
    n_t = H // tile_h

    # explicit VMEM budget: double-buffered blocks + in-kernel working set, clamp [16,64] MiB
    itm_x = jnp.dtype(x_nchw.dtype).itemsize
    in_b = Hp * Wp * Cin * itm_x
    w_b = s * k_fold * sc * itm_x + sc * 4
    out_b = tile_h * s * W * sc * jnp.dtype(interm_dtype).itemsize + 2 * Cout * 4
    work_b = 4 * tile_h * W * (k_fold + 2 * sc) * 4
    vmem_limit = int(min(64 << 20,
                         max(16 << 20, 2 * (in_b + w_b + out_b) + work_b + (2 << 20))))

    kern = _make_deconv_kernel(W=W, Cin=Cin, Cout=Cout, s=s, Dh=Dh, Dw=Dh,
                               pad_lo=pad_lo, tile_h=tile_h,
                               apply_relu=not use_batch_norm,
                               emit_stats=use_batch_norm)

    y_shape = jax.ShapeDtypeStruct((N, H, s, W, sc), interm_dtype)
    y_spec = pl.BlockSpec((1, tile_h, s, W, sc), lambda n, t: (n, t, 0, 0, 0))
    if use_batch_norm:
        assert bn_gamma is not None and bn_beta is not None
        stat_shape = jax.ShapeDtypeStruct((N, n_t, 1, Cout), jnp.float32)
        stat_spec = pl.BlockSpec((1, 1, 1, Cout), lambda n, t: (n, t, 0, 0))
        out_shape = (y_shape, stat_shape, stat_shape)
        out_specs = (y_spec, stat_spec, stat_spec)
    else:
        out_shape = y_shape
        out_specs = y_spec

    res = pl.pallas_call(
        kern,
        out_shape=out_shape,
        grid_spec=pltpu.PrefetchScalarGridSpec(
            num_scalar_prefetch=0,
            grid=(N, n_t),
            in_specs=[
                # whole padded image per batch; block index ignores t, so consecutive
                # h-tiles revisit the resident buffer (no redundant DMA).
                pl.BlockSpec((1, Hp, Wp, Cin), lambda n, t: (n, 0, 0, 0)),
                pl.BlockSpec((s, k_fold, sc), lambda n, t: (0, 0, 0)),
                pl.BlockSpec((1, sc), lambda n, t: (0, 0)),
            ],
            out_specs=out_specs,
        ),
        compiler_params=pltpu.CompilerParams(
            dimension_semantics=("parallel", "parallel"),
            vmem_limit_bytes=vmem_limit),
    )(x_pad, wmat, bias_t)

    if use_batch_norm:
        y_int, ssum, ssq = res
        # Training-mode BatchNorm2d: batch statistics, biased variance (f32 throughout).
        count = N * H_out * W_out
        ch_sum = jnp.sum(ssum, axis=(0, 1, 2))
        ch_sq = jnp.sum(ssq, axis=(0, 1, 2))
        mean = ch_sum / count
        var = jnp.maximum(ch_sq / count - mean * mean, 0.0)
        scale = bn_gamma.astype(jnp.float32) / jnp.sqrt(var + eps)
        shift = bn_beta.astype(jnp.float32) - mean * scale
        scale_t = jnp.tile(scale, (s,)).reshape(1, sc)
        shift_t = jnp.tile(shift, (s,)).reshape(1, sc)
        y_flat = pl.pallas_call(
            _bn_relu_kernel,
            out_shape=jax.ShapeDtypeStruct((N, H, s, W, sc), x_nchw.dtype),
            grid_spec=pltpu.PrefetchScalarGridSpec(
                num_scalar_prefetch=0,
                grid=(N, n_t),
                in_specs=[
                    pl.BlockSpec((1, tile_h, s, W, sc), lambda n, t: (n, t, 0, 0, 0)),
                    pl.BlockSpec((1, sc), lambda n, t: (0, 0)),
                    pl.BlockSpec((1, sc), lambda n, t: (0, 0)),
                ],
                out_specs=pl.BlockSpec((1, tile_h, s, W, sc),
                                       lambda n, t: (n, t, 0, 0, 0)),
            ),
            compiler_params=pltpu.CompilerParams(
                dimension_semantics=("parallel", "parallel"),
                vmem_limit_bytes=vmem_limit),
        )(y_int, scale_t, shift_t)
    else:
        y_flat = res

    # free reshape: (N, H, s, W, s*Cout) has exactly the (N, H*s, W*s, Cout) element order
    y_nhwc = y_flat.reshape(N, H_out, W_out, Cout)
    return jnp.transpose(y_nhwc, (0, 3, 1, 2))                 # NCHW (interface glue)


# ----------------------------------------------------------------------------- reference

def _reference_forward(x, weight, bias, k, s, p, use_batch_norm=False,
                       bn_gamma=None, bn_beta=None, eps=1e-5):
    """Pure-JAX reference: ConvTranspose2d == dilated conv with flipped kernel."""
    w_flip = weight[:, :, ::-1, ::-1]                    # (Cin, Cout, k, k)
    w_oihw = jnp.transpose(w_flip, (1, 0, 2, 3))         # (Cout, Cin, k, k)
    y = lax.conv_general_dilated(
        x, w_oihw, window_strides=(1, 1),
        padding=[(k - 1 - p, k - 1 - p)] * 2,
        lhs_dilation=(s, s),
        dimension_numbers=('NCHW', 'OIHW', 'NCHW'))
    y = y + bias[None, :, None, None]
    if use_batch_norm:
        mean = jnp.mean(y, axis=(0, 2, 3), keepdims=True)
        var = jnp.mean((y - mean) ** 2, axis=(0, 2, 3), keepdims=True)
        y = (y - mean) / jnp.sqrt(var + eps)
        y = y * bn_gamma[None, :, None, None] + bn_beta[None, :, None, None]
    return jnp.maximum(y, 0.0)


if __name__ == "__main__":
    key = jax.random.PRNGKey(0)
    k_x, k_w, k_b = jax.random.split(key, 3)

    N, Cin, H, W = 2, 4, 16, 16
    Cout, ksize, up = 8, 4, 2
    pad = (ksize - up) // 2

    x = jax.random.normal(k_x, (N, Cin, H, W), dtype=jnp.float32)
    fan = Cin * ksize * ksize
    bound = 1.0 / float(fan) ** 0.5
    weight = jax.random.uniform(k_w, (Cin, Cout, ksize, ksize),
                                minval=-bound, maxval=bound, dtype=jnp.float32)
    bias = jax.random.uniform(k_b, (Cout,), minval=-bound, maxval=bound,
                              dtype=jnp.float32)
    gamma = jnp.full((Cout,), 1.2, jnp.float32)
    beta = jnp.full((Cout,), 0.1, jnp.float32)

    # no-BN path (auto tile -> single H tile)
    fwd = jax.jit(functools.partial(transposed_cnn_block_2d,
                                    kernel_size=ksize, up_sample=up,
                                    use_batch_norm=False))
    y = jax.block_until_ready(fwd(x, weight, bias))
    y_ref = _reference_forward(x, weight, bias, ksize, up, pad)
    assert y.shape == (N, Cout, H * up, W * up)
    assert jnp.allclose(y, y_ref, atol=1e-4, rtol=1e-4), "deconv+relu mismatch"

    # no-BN path with explicit H tiling (exercises the multi-tile parallel grid)
    fwd_t = jax.jit(functools.partial(transposed_cnn_block_2d,
                                      kernel_size=ksize, up_sample=up,
                                      use_batch_norm=False, tile_h=8))
    y_t = jax.block_until_ready(fwd_t(x, weight, bias))
    assert jnp.allclose(y_t, y_ref, atol=1e-4, rtol=1e-4), "tiled deconv mismatch"

    # BatchNorm path (fused stats + affine/ReLU pass), tiled
    fwd_bn = jax.jit(functools.partial(transposed_cnn_block_2d,
                                       kernel_size=ksize, up_sample=up,
                                       use_batch_norm=True, tile_h=8))
    y_bn = jax.block_until_ready(fwd_bn(x, weight, bias,
                                        bn_gamma=gamma, bn_beta=beta))
    y_bn_ref = _reference_forward(x, weight, bias, ksize, up, pad,
                                  use_batch_norm=True, bn_gamma=gamma, bn_beta=beta)
    assert jnp.allclose(y_bn, y_bn_ref, atol=2e-4, rtol=2e-4), "bn+relu mismatch"

    print("KERNEL_OK")
</pallas_src>

<mosaic_0001>
module attributes {stable_mosaic.version = 11 : i64} {
  func.func @kernel(%arg0: i32, %arg1: i32, %arg2: memref<1x18x18x4xf32, #tpu.memory_space<vmem>>, %arg3: memref<2x36x16xf32, #tpu.memory_space<vmem>>, %arg4: memref<1x16xf32, #tpu.memory_space<vmem>>, %arg5: memref<1x16x2x16x16xf32, #tpu.memory_space<vmem>>) attributes {dimension_semantics = [#tpu.dimension_semantics<parallel>, #tpu.dimension_semantics<parallel>], iteration_bounds = array<i64: 2, 1>, scalar_prefetch = 0 : i64, scratch_operands = 0 : i64, tpu.core_type = #tpu.core_type<tc>, window_params = [{transform_indices = @transform_0, window_bounds = array<i64: 1, 18, 18, 4>}, {pipeline_mode = #tpu.pipeline_mode<synchronous>, transform_indices = @transform_1, window_bounds = array<i64: 2, 36, 16>}, {pipeline_mode = #tpu.pipeline_mode<synchronous>, transform_indices = @transform_2, window_bounds = array<i64: 1, 16>}, {transform_indices = @transform_3, window_bounds = array<i64: 1, 16, 2, 16, 16>}]} {
    %c16_i32 = arith.constant 16 : i32
    %0 = arith.muli %arg1, %c16_i32 : i32
    %1 = tpu.assume_multiple %0, 8 : i32
    %c1_i32 = arith.constant 1 : i32
    %2 = arith.addi %1, %c1_i32 : i32
    %c-1_i32 = arith.constant -1 : i32
    %3 = arith.addi %2, %c-1_i32 : i32
    %c0 = arith.constant 0 : index
    %4 = arith.index_cast %3 : i32 to index
    %c0_0 = arith.constant 0 : index
    %c0_1 = arith.constant 0 : index
    %5 = vector.load %arg2[%c0, %4, %c0_0, %c0_1] : memref<1x18x18x4xf32, #tpu.memory_space<vmem>>, vector<1x16x18x4xf32>
    %6 = vector.shape_cast %5 : vector<1x16x18x4xf32> to vector<16x18x4xf32>
    %7 = vector.extract_strided_slice %6 {offsets = [0, 0, 0], sizes = [16, 16, 4], strides = [1, 1, 1]} : vector<16x18x4xf32> to vector<16x16x4xf32>
    %8 = vector.extract_strided_slice %6 {offsets = [0, 1, 0], sizes = [16, 16, 4], strides = [1, 1, 1]} : vector<16x18x4xf32> to vector<16x16x4xf32>
    %9 = vector.extract_strided_slice %6 {offsets = [0, 2, 0], sizes = [16, 16, 4], strides = [1, 1, 1]} : vector<16x18x4xf32> to vector<16x16x4xf32>
    %c1_i32_2 = arith.constant 1 : i32
    %10 = arith.addi %1, %c1_i32_2 : i32
    %c0_i32 = arith.constant 0 : i32
    %11 = arith.addi %10, %c0_i32 : i32
    %c0_3 = arith.constant 0 : index
    %12 = arith.index_cast %11 : i32 to index
    %c0_4 = arith.constant 0 : index
    %c0_5 = arith.constant 0 : index
    %13 = vector.load %arg2[%c0_3, %12, %c0_4, %c0_5] : memref<1x18x18x4xf32, #tpu.memory_space<vmem>>, vector<1x16x18x4xf32>
    %14 = vector.shape_cast %13 : vector<1x16x18x4xf32> to vector<16x18x4xf32>
    %15 = vector.extract_strided_slice %14 {offsets = [0, 0, 0], sizes = [16, 16, 4], strides = [1, 1, 1]} : vector<16x18x4xf32> to vector<16x16x4xf32>
    %16 = vector.extract_strided_slice %14 {offsets = [0, 1, 0], sizes = [16, 16, 4], strides = [1, 1, 1]} : vector<16x18x4xf32> to vector<16x16x4xf32>
    %17 = vector.extract_strided_slice %14 {offsets = [0, 2, 0], sizes = [16, 16, 4], strides = [1, 1, 1]} : vector<16x18x4xf32> to vector<16x16x4xf32>
    %c1_i32_6 = arith.constant 1 : i32
    %18 = arith.addi %1, %c1_i32_6 : i32
    %c1_i32_7 = arith.constant 1 : i32
    %19 = arith.addi %18, %c1_i32_7 : i32
    %c0_8 = arith.constant 0 : index
    %20 = arith.index_cast %19 : i32 to index
    %c0_9 = arith.constant 0 : index
    %c0_10 = arith.constant 0 : index
    %21 = vector.load %arg2[%c0_8, %20, %c0_9, %c0_10] : memref<1x18x18x4xf32, #tpu.memory_space<vmem>>, vector<1x16x18x4xf32>
    %22 = vector.shape_cast %21 : vector<1x16x18x4xf32> to vector<16x18x4xf32>
    %23 = vector.extract_strided_slice %22 {offsets = [0, 0, 0], sizes = [16, 16, 4], strides = [1, 1, 1]} : vector<16x18x4xf32> to vector<16x16x4xf32>
    %24 = vector.extract_strided_slice %22 {offsets = [0, 1, 0], sizes = [16, 16, 4], strides = [1, 1, 1]} : vector<16x18x4xf32> to vector<16x16x4xf32>
    %25 = vector.extract_strided_slice %22 {offsets = [0, 2, 0], sizes = [16, 16, 4], strides = [1, 1, 1]} : vector<16x18x4xf32> to vector<16x16x4xf32>
    %26 = tpu.concatenate %7, %8, %9, %15, %16, %17, %23, %24, %25 in 2 : vector<16x16x4xf32>, vector<16x16x4xf32>, vector<16x16x4xf32>, vector<16x16x4xf32>, vector<16x16x4xf32>, vector<16x16x4xf32>, vector<16x16x4xf32>, vector<16x16x4xf32>, vector<16x16x4xf32> -> vector<16x16x36xf32>
    %27 = vector.shape_cast %26 : vector<16x16x36xf32> to vector<256x36xf32>
    %c0_11 = arith.constant 0 : index
    %c0_12 = arith.constant 0 : index
    %28 = vector.load %arg4[%c0_11, %c0_12] : memref<1x16xf32, #tpu.memory_space<vmem>>, vector<1x16xf32>
    %c0_13 = arith.constant 0 : index
    %c0_14 = arith.constant 0 : index
    %c0_15 = arith.constant 0 : index
    %29 = vector.load %arg3[%c0_13, %c0_14, %c0_15] : memref<2x36x16xf32, #tpu.memory_space<vmem>>, vector<1x36x16xf32>
    %30 = vector.shape_cast %29 : vector<1x36x16xf32> to vector<36x16xf32>
    %cst = arith.constant dense<0.000000e+00> : vector<256x16xf32>
    %31 = tpu.matmul %27, %30, %cst {dimension_numbers = #tpu.dot_dimension_numbers<[1], [0], [0], [1], [0, 0, 1, 1], [], []>} : vector<256x36xf32>, vector<36x16xf32>, vector<256x16xf32> -> vector<256x16xf32>
    %32 = vector.broadcast %28 : vector<1x16xf32> to vector<256x16xf32>
    %33 = arith.addf %31, %32 : vector<256x16xf32>
    %cst_16 = arith.constant 0.000000e+00 : f32
    %34 = vector.broadcast %cst_16 : f32 to vector<256x16xf32>
    %35 = arith.maximumf %33, %34 : vector<256x16xf32>
    %36 = vector.shape_cast %35 : vector<256x16xf32> to vector<16x16x16xf32>
    %c0_17 = arith.constant 0 : index
    %c0_18 = arith.constant 0 : index
    %c0_19 = arith.constant 0 : index
    %c0_20 = arith.constant 0 : index
    %c0_21 = arith.constant 0 : index
    %37 = vector.load %arg5[%c0_17, %c0_18, %c0_19, %c0_20, %c0_21] : memref<1x16x2x16x16xf32, #tpu.memory_space<vmem>>, vector<1x16x1x16x16xf32>
    %38 = vector.shape_cast %37 : vector<1x16x1x16x16xf32> to vector<16x16x16xf32>
    %39 = vector.shape_cast %36 : vector<16x16x16xf32> to vector<1x16x1x16x16xf32>
    tpu.vector_store %arg5[%c0_17, %c0_18, %c0_19, %c0_20, %c0_21], %39 {strides = array<i32>} : memref<1x16x2x16x16xf32, #tpu.memory_space<vmem>>, vector<1x16x1x16x16xf32>,
    %c1 = arith.constant 1 : index
    %c0_22 = arith.constant 0 : index
    %c0_23 = arith.constant 0 : index
    %40 = vector.load %arg3[%c1, %c0_22, %c0_23] : memref<2x36x16xf32, #tpu.memory_space<vmem>>, vector<1x36x16xf32>
    %41 = vector.shape_cast %40 : vector<1x36x16xf32> to vector<36x16xf32>
    %cst_24 = arith.constant dense<0.000000e+00> : vector<256x16xf32>
    %42 = tpu.matmul %27, %41, %cst_24 {dimension_numbers = #tpu.dot_dimension_numbers<[1], [0], [0], [1], [0, 0, 1, 1], [], []>} : vector<256x36xf32>, vector<36x16xf32>, vector<256x16xf32> -> vector<256x16xf32>
    %43 = vector.broadcast %28 : vector<1x16xf32> to vector<256x16xf32>
    %44 = arith.addf %42, %43 : vector<256x16xf32>
    %cst_25 = arith.constant 0.000000e+00 : f32
    %45 = vector.broadcast %cst_25 : f32 to vector<256x16xf32>
    %46 = arith.maximumf %44, %45 : vector<256x16xf32>
    %47 = vector.shape_cast %46 : vector<256x16xf32> to vector<16x16x16xf32>
    %c0_26 = arith.constant 0 : index
    %c0_27 = arith.constant 0 : index
    %c1_28 = arith.constant 1 : index
    %c0_29 = arith.constant 0 : index
    %c0_30 = arith.constant 0 : index
    %48 = vector.load %arg5[%c0_26, %c0_27, %c1_28, %c0_29, %c0_30] : memref<1x16x2x16x16xf32, #tpu.memory_space<vmem>>, vector<1x16x1x16x16xf32>
    %49 = vector.shape_cast %48 : vector<1x16x1x16x16xf32> to vector<16x16x16xf32>
    %50 = vector.shape_cast %47 : vector<16x16x16xf32> to vector<1x16x1x16x16xf32>
    tpu.vector_store %arg5[%c0_26, %c0_27, %c1_28, %c0_29, %c0_30], %50 {strides = array<i32>} : memref<1x16x2x16x16xf32, #tpu.memory_space<vmem>>, vector<1x16x1x16x16xf32>,
    return
  }
  func.func @transform_0(%arg0: i32, %arg1: i32) -> (i32, i32, i32, i32) {
    %c0_i32 = arith.constant 0 : i32
    %c0_i32_0 = arith.constant 0 : i32
    %c0_i32_1 = arith.constant 0 : i32
    %c0_i32_2 = arith.constant 0 : i32
    return %arg0, %c0_i32, %c0_i32_0, %c0_i32_1 : i32, i32, i32, i32
  }
  func.func @transform_1(%arg0: i32, %arg1: i32) -> (i32, i32, i32) {
    %c0_i32 = arith.constant 0 : i32
    %c0_i32_0 = arith.constant 0 : i32
    %c0_i32_1 = arith.constant 0 : i32
    %c0_i32_2 = arith.constant 0 : i32
    return %c0_i32, %c0_i32_0, %c0_i32_1 : i32, i32, i32
  }
  func.func @transform_2(%arg0: i32, %arg1: i32) -> (i32, i32) {
    %c0_i32 = arith.constant 0 : i32
    %c0_i32_0 = arith.constant 0 : i32
    %c0_i32_1 = arith.constant 0 : i32
    return %c0_i32, %c0_i32_0 : i32, i32
  }
  func.func @transform_3(%arg0: i32, %arg1: i32) -> (i32, i32, i32, i32, i32) {
    %c0_i32 = arith.constant 0 : i32
    %c0_i32_0 = arith.constant 0 : i32
    %c0_i32_1 = arith.constant 0 : i32
    %c0_i32_2 = arith.constant 0 : i32
    return %arg0, %arg1, %c0_i32, %c0_i32_0, %c0_i32_1 : i32, i32, i32, i32, i32
  }
}

</mosaic_0001>

<bundles_post_ra>
// kernel: tile.9
= control target key start
LH: loop header
LB: loop body
LE: loop exit
PB: predicated region body
PF: predicated region fallthrough
CT: control target
= control target key end

     0   :  { %vm7_vm0 = vcmask 64512   ;;  %vm13_vm1 = vcmask 130112   ;;  %s39_s0 = inlined_call_operand.vmem [shape: f32[2,8], index: 0, kind: input, shape index: {}]   ;;  %s40_s1 = inlined_call_operand.vmem [shape: f32[1,16], index: 1, kind: output, shape index: {}]  }
   0x1   :  { %v4_v0 = vld [vmem:[%s39_s0] sm:$0x3]  ;;  %s22_s0 = smov 8  }
   0x2   :  { %5 = vst [vmem:[#allocation1] sm:$0x3] %v4_v0 }
   0x9   :  { %v10_v1 = vld [vmem:[#allocation1 + $0x1] sm:$0x1]   ;;  %v6_v2 = vld [vmem:[#allocation1] sm:$0x1]  }
   0xa   :  { %11 = vrot.lane.b32.xlu0 %v10_v1, %s22_s0  ;;  %8 = vst.msk [vmem:[#allocation0] sm:$0x1] %vm7_vm0, %v6_v2  }
  0x7c   :  { %v12_v3 = vpop.permute.xlu0 %11  }
  0x7d   :  { %14 = vst.msk [vmem:[#allocation0] sm:$0x1] %vm13_vm1, %v12_v3  }
  0x84   :  { %v18_v4 = vld [vmem:[#allocation0] sm:$0x1] }
  0x85   :  { %20 = vst [vmem:[%s40_s1] sm:$0x1] %v18_v4 }

// kernel: tile.8
= control target key start
LH: loop header
LB: loop body
LE: loop exit
PB: predicated region body
PF: predicated region fallthrough
CT: control target
= control target key end

     0   :  { %s22_s0 = inlined_call_operand.vmem [shape: f32[8], index: 0, kind: input, shape index: {}]   ;;  %s23_s1 = inlined_call_operand.vmem [shape: f32[2,8], index: 1, kind: output, shape index: {}]  }
   0x1   :  { %v4_v0 = vld [vmem:[%s22_s0] ss:$0 sm:$0xff] }
   0x2   :  { %5 = vst [vmem:[%s23_s1] sm:$0x3] %v4_v0 }

// kernel: transposed_cnn_block_2d.1
= control target key start
LH: loop header
LB: loop body
LE: loop exit
PB: predicated region body
PF: predicated region fallthrough
CT: control target
= control target key end

     0   :  { %s3314_s12 = smov 0   ;;  %s3316_s13 = smov 0   ;;  %s5171_s0 = inlined_call_operand.vmem [shape: f32[2,18,18,4], index: 0, kind: input, shape index: {}]   ;;  %s5172_s1 = inlined_call_operand.vmem [shape: f32[2,36,16], index: 1, kind: input, shape index: {}]   ;;  %s5173_s2 = inlined_call_operand.vmem [shape: f32[1,16], index: 2, kind: input, shape index: {}]   ;;  %s5174_s3 = inlined_call_operand.vmem [shape: f32[2,16,2,16,16], index: 3, kind: output, shape index: {}]  }
   0x1   :  { %s3318_s14 = smov 0  }
   0x2 LB: > { %s25_s15 = sadd.s32 1, %s3280_s13  ;;  %p2809_p0 = scmp.ge.s32.totalorder %s3284_s14, 1  ;;  %s3284_s14 = sphi %s3318_s14, %s13_s14   ;;  %s3280_s13 = sphi %s3316_s13, %s5336_s13   ;;  %s3276_s12 = sphi %s3314_s12, %s5335_s12  }
   0x3   : > { %p27_p1 = scmp.ge.s32.totalorder %s25_s15, 2  ;;  %p151_p2 = scmp.lt.s32.totalorder %s3284_s14, 3 }
   0x5   : > { %s5338_s15 = smov (%p27_p1, %s25_s15), 0  ;;  %p152_p3 = pnand %p2809_p0, %p151_p2 }
   0x7   : > { %155 = sbr.rel (%p152_p3) target bundleno = 868 (0x364), region = 32 }
   0xe   : > { %p180_p4 = scmp.lt.s32.totalorder %s3276_s12, 1  ;;  %vm397_vm0 = vcmask 1046528   ;;  %s3286_s20 = smov 4   ;;  %vm574_vm1 = vcmask 1045504   ;;  %vm2116_vm2 = vcmask 1043456   ;;  %vm1743_vm3 = vcmask 31744  }
   0xf   : > { %s3287_s21 = smov 8   ;;  %s3288_s22 = smov 12   ;;  %vm1776_vm4 = vcmask 64512   ;;  %vm1809_vm5 = vcmask 97280   ;;  %vm1842_vm6 = vcmask 130048   ;;  %vm1875_vm7 = vcmask 162816  }
  0x10   : > { %s5340_s12 = smov (!%p180_p4, %s3276_s12), 1  ;;  %s3289_s23 = smov 16   ;;  %vm1908_vm8 = vcmask 195584   ;;  %vm1941_vm9 = vcmask 228352   ;;  %vm1974_vm10 = vcmask 261120   ;;  %vm2019_vm11 = vcmask 293888  }
  0x11   : > { %s3222_s16 = smul.u32 432, %s5340_s12  ;;  %s3290_s5 = smov 20  }
  0x12   : > { %s3291_s18 = smov 24   ;;  %s3292_s26 = smov 28  }
  0x13   : > { %s3338_s19 = scalar_lea.vmem %s5171_s0, %s3222_s16  ;;  %s3293_s27 = smov 32  }
  0x14   : > { %v3341_v0 = vld [vmem:[%s3338_s19 + $0x18] sm:$0xff]  ;;  %v3344_v1 = vld [vmem:[%s3338_s19 + $0x20] sm:$0xff]  ;;  %v3354_v5 = vld [vmem:[%s3338_s19 + $0x8] sm:$0xff] }
  0x15   : > { %v3347_v2 = vld [vmem:[%s3338_s19] sm:$0xff]  ;;  %v403_v3 = vrot.slane %v3341_v0, 1  ;;  %v3351_v4 = vrot.slane %v3344_v1, 1  ;;  %v3358_v7 = vld [vmem:[%s3338_s19 + $0x28] sm:$0x3]  ;;  %v399_v8 = vrot.slane %v3354_v5, 1 }
  0x16   : > { %v398_v6 = vrot.slane %v3347_v2, 1  ;;  %v406_v9 = vrot.slane %v3358_v7, 1  ;;  %v3363_v10 = vld [vmem:[%s3338_s19 + $0x10] sm:$0x3]  ;;  %v3366_v11 = vld [vmem:[%s3338_s19 + $0x38] sm:$0xff]  ;;  %v3398_v24 = vld [vmem:[%s3338_s19 + $0x48] sm:$0xff] }
  0x17   : > { %v3370_v12 = vsel %vm397_vm0, %v403_v3, %v3351_v4  ;;  %v401_v13 = vrot.slane %v3363_v10, 1  ;;  %v3374_v14 = vld [vmem:[%s3338_s19 + $0x40] sm:$0x3]  ;;  %v3377_v15 = vld [vmem:[%s3338_s19 + $0x30] sm:$0xff]  ;;  %v3386_v18 = vrot.slane %v3366_v11, 1  ;;  %v413_v29 = vrot.slane %v3398_v24, 1 }
  0x18   : > { %482 = vrot.lane.b32.xlu1 %v3370_v12, %s3286_s20  ;;  %v400_v16 = vsel %vm397_vm0, %v398_v6, %v399_v8  ;;  %v407_v17 = vsel %vm397_vm0, %v3351_v4, %v406_v9  ;;  %v411_v19 = vrot.slane %v3374_v14, 1  ;;  %v408_v21 = vrot.slane %v3377_v15, 1  ;;  %v3392_v22 = vld [vmem:[%s3338_s19 + $0x50] sm:$0xff]  ;;  %v3395_v23 = vld [vmem:[%s3338_s19 + $0x58] sm:$0x3]  ;;  %v3414_v30 = vld [vmem:[%s3338_s19 + $0x68] sm:$0xff] }
  0x19   : > { %478 = vrot.lane.b32.xlu0 %v400_v16, %s3286_s20  ;;  %v402_v20 = vsel %vm397_vm0, %v399_v8, %v401_v13  ;;  %v3405_v26 = vrot.slane %v3392_v22, 1  ;;  %v416_v27 = vrot.slane %v3395_v23, 1  ;;  %v3417_v31 = vld [vmem:[%s3338_s19 + $0x70] sm:$0x3]  ;;  %v3420_v32 = vld [vmem:[%s3338_s19 + $0x60] sm:$0xff]  ;;  %v3428_v34 = vrot.slane %v3414_v30, 1 }
  0x1a   : > { %v412_v25 = vsel %vm397_vm0, %v3386_v18, %v411_v19  ;;  %v3410_v28 = vsel %vm397_vm0, %v408_v21, %v3386_v18  ;;  %v421_v35 = vrot.slane %v3417_v31, 1  ;;  %v418_v37 = vrot.slane %v3420_v32, 1  ;;  %v3437_v38 = vld [vmem:[%s3338_s19 + $0x80] sm:$0xff]  ;;  %v3440_v39 = vld [vmem:[%s3338_s19 + $0x88] sm:$0x3]  ;;  %v3443_v40 = vld [vmem:[%s3338_s19 + $0x78] sm:$0xff] }
  0x1b   : > { %5217 = vst [vmem:[#allocation2_spill] sm:$0xff] %v3405_v26  ;;  %v417_v33 = vsel %vm397_vm0, %v3405_v26, %v416_v27  ;;  %5218 = vst [vmem:[#allocation3_spill] sm:$0xff] %v3428_v34  ;;  %v3433_v36 = vsel %vm397_vm0, %v413_v29, %v3405_v26  ;;  %v3451_v42 = vrot.slane %v3437_v38, 1  ;;  %v426_v43 = vrot.slane %v3440_v39, 1  ;;  %v3460_v46 = vld [vmem:[%s3338_s19 + $0x98] sm:$0xff]  ;;  %v3466_v48 = vld [vmem:[%s3338_s19 + $0x90] sm:$0xff] }
  0x1c   : > { %484 = vrot.lane.b32.xlu1 %v407_v17, %s3286_s20  ;;  %5219 = vst [vmem:[#allocation4_spill] sm:$0xff] %v3433_v36  ;;  %v422_v41 = vsel %vm397_vm0, %v3428_v34, %v421_v35  ;;  %v3456_v44 = vsel %vm397_vm0, %v418_v37, %v3428_v34  ;;  %v423_v45 = vrot.slane %v3443_v40, 1  ;;  %v3463_v47 = vld [vmem:[%s3338_s19 + $0xa0] sm:$0x3]  ;;  %v3474_v50 = vrot.slane %v3460_v46, 1  ;;  %v3483_v54 = vld [vmem:[%s3338_s19 + $0xb0] sm:$0xff] }
  0x1d   : > { %480 = vrot.lane.b32.xlu0 %v402_v20, %s3286_s20  ;;  %5220 = vst [vmem:[#allocation5_spill] sm:$0xff] %v3451_v42  ;;  %5221 = vst [vmem:[#allocation6_spill] sm:$0xff] %v3456_v44  ;;  %v427_v49 = vsel %vm397_vm0, %v3451_v42, %v426_v43  ;;  %v431_v51 = vrot.slane %v3463_v47, 1  ;;  %v428_v53 = vrot.slane %v3466_v48, 1  ;;  %v3486_v55 = vld [vmem:[%s3338_s19 + $0xb8] sm:$0x3] }
  0x1e   : > { %5222 = vst [vmem:[#allocation7_spill] sm:$0xff] %v3474_v50  ;;  %v3479_v52 = vsel %vm397_vm0, %v423_v45, %v3451_v42  ;;  %v3489_v56 = vld [vmem:[%s3338_s19 + $0xa8] sm:$0xff]  ;;  %v3497_v58 = vrot.slane %v3483_v54, 1  ;;  %v436_v59 = vrot.slane %v3486_v55, 1  ;;  %v3509_v63 = vld [vmem:[%s3338_s19 + $0xd0] sm:$0x3] }
  0x1f   : > { %5223 = vst [vmem:[#allocation8_spill] sm:$0xff] %v3479_v52  ;;  %v432_v57 = vsel %vm397_vm0, %v3474_v50, %v431_v51  ;;  %v3502_v60 = vsel %vm397_vm0, %v428_v53, %v3474_v50  ;;  %v433_v61 = vrot.slane %v3489_v56, 1  ;;  %v3506_v62 = vld [vmem:[%s3338_s19 + $0xc8] sm:$0xff]  ;;  %v3512_v3 = vld [vmem:[%s3338_s19 + $0xc0] sm:$0xff]  ;;  %v441_v9 = vrot.slane %v3509_v63, 1  ;;  %v3535_v20 = vld [vmem:[%s3338_s19 + $0xd8] sm:$0xff] }
  0x20   : > { %488 = vrot.lane.b32.xlu1 %v412_v25, %s3286_s20  ;;  %5224 = vst [vmem:[#allocation9_spill] sm:$0xff] %v3497_v58  ;;  %5225 = vst [vmem:[#allocation10_spill] sm:$0xff] %v3502_v60  ;;  %v437_v6 = vsel %vm397_vm0, %v3497_v58, %v436_v59  ;;  %v3520_v8 = vrot.slane %v3506_v62, 1  ;;  %v438_v16 = vrot.slane %v3512_v3, 1  ;;  %v3529_v17 = vld [vmem:[%s3338_s19 + $0xe0] sm:$0xff]  ;;  %v3552_v35 = vld [vmem:[%s3338_s19 + $0xf8] sm:$0xff] }
  0x21   : > { %486 = vrot.lane.b32.xlu0 %v3410_v28, %s3286_s20  ;;  %v3525_v13 = vsel %vm397_vm0, %v433_v61, %v3497_v58  ;;  %v3532_v19 = vld [vmem:[%s3338_s19 + $0xe8] sm:$0x3]  ;;  %v3543_v25 = vrot.slane %v3529_v17, 1  ;;  %v3555_v37 = vld [vmem:[%s3338_s19 + $0x100] sm:$0x3]  ;;  %v3566_v45 = vrot.slane %v3552_v35, 1 }
  0x22   : > { %5226 = vst [vmem:[#allocation11_spill] sm:$0xff] %v3520_v8  ;;  %5227 = vst [vmem:[#allocation12_spill] sm:$0xff] %v3525_v13  ;;  %v442_v21 = vsel %vm397_vm0, %v3520_v8, %v441_v9  ;;  %v446_v27 = vrot.slane %v3532_v19, 1  ;;  %v3548_v29 = vsel %vm397_vm0, %v438_v16, %v3520_v8  ;;  %v3578_v59 = vld [vmem:[%s3338_s19 + $0x118] sm:$0x3]  ;;  %v3581_v61 = vld [vmem:[%s3338_s19 + $0x108] sm:$0xff] }
  0x23   : > { %5228 = vst [vmem:[#allocation13_spill] sm:$0xff] %v3543_v25  ;;  %5229 = vst [vmem:[#allocation14_spill] sm:$0xff] %v3548_v29  ;;  %v456_v16 = vrot.slane %v3578_v59, 1  ;;  %v3636_v50 = vld [vmem:[%s3338_s19 + $0x158] sm:$0xff] }
  0x24   : > { %492 = vrot.lane.b32.xlu1 %v417_v33, %s3286_s20  ;;  %v443_v33 = vrot.slane %v3535_v20, 1  ;;  %v447_v43 = vsel %vm397_vm0, %v3543_v25, %v446_v27  ;;  %5230 = vst [vmem:[#allocation15_spill] sm:$0xff] %v3566_v45  ;;  %v453_v27 = vrot.slane %v3581_v61, 1  ;;  %5235 = vst [vmem:[#allocation20_spill] sm:$0xff] %v3636_v50  ;;  %v3655_v34 = vld [vmem:[%s3338_s19 + $0x178] sm:$0x3] }
  0x25   : > { %490 = vrot.lane.b32.xlu0 %v3433_v36, %s3286_s20  ;;  %v575_v36 = vrot.slane %v3347_v2, 2 }
  0x26   : > { %v3571_v51 = vsel %vm397_vm0, %v443_v33, %v3543_v25  ;;  %v3598_v33 = vld [vmem:[%s3338_s19 + $0x128] sm:$0xff]  ;;  %v3604_v25 = vld [vmem:[%s3338_s19 + $0x120] sm:$0xff] }
  0x27   : > { %5231 = vst [vmem:[#allocation16_spill] sm:$0xff] %v3571_v51  ;;  %v458_v8 = vrot.slane %v3604_v25, 1 }
  0x28   : > { %496 = vrot.lane.b32.xlu1 %v422_v41, %s3286_s20  ;;  %v3558_v41 = vld [vmem:[%s3338_s19 + $0xf0] sm:$0xff] }
  0x29   : > { %494 = vrot.lane.b32.xlu0 %v3456_v44, %s3286_s20  ;;  %v448_v53 = vrot.slane %v3558_v41, 1  ;;  %v3658_v44 = vld [vmem:[%s3338_s19 + $0x168] sm:$0xff] }
  0x2a   : > { %5238 = vst [vmem:[#allocation23_spill] sm:$0xff] %v3658_v44 }
  0x2c   : > { %500 = vrot.lane.b32.xlu1 %v427_v49, %s3286_s20  ;;  %v451_v49 = vrot.slane %v3555_v37, 1 }
  0x2d   : > { %498 = vrot.lane.b32.xlu0 %v3479_v52, %s3286_s20  ;;  %v3652_v52 = vld [vmem:[%s3338_s19 + $0x170] sm:$0xff] }
  0x2e   : > { %5237 = vst [vmem:[#allocation22_spill] sm:$0xff] %v3652_v52 }
  0x30   : > { %504 = vrot.lane.b32.xlu1 %v432_v57, %s3286_s20  ;;  %v3575_v57 = vld [vmem:[%s3338_s19 + $0x110] sm:$0xff] }
  0x31   : > { %502 = vrot.lane.b32.xlu0 %v3502_v60, %s3286_s20  ;;  %v3589_v9 = vrot.slane %v3575_v57, 1  ;;  %v3639_v60 = vld [vmem:[%s3338_s19 + $0x160] sm:$0x3] }
  0x32   : > { %v471_v42 = vrot.slane %v3639_v60, 1 }
  0x33   : > { %5232 = vst [vmem:[#allocation17_spill] sm:$0xff] %v3589_v9 }
  0x34   : > { %508 = vrot.lane.b32.xlu1 %v437_v6, %s3286_s20  ;;  %v452_v6 = vsel %vm397_vm0, %v3566_v45, %v451_v49  ;;  %v457_v49 = vsel %vm397_vm0, %v3589_v9, %v456_v16 }
  0x35   : > { %506 = vrot.lane.b32.xlu0 %v3525_v13, %s3286_s20 }
  0x38   : > { %512 = vrot.lane.b32.xlu1 %v442_v21, %s3286_s20  ;;  %v3594_v21 = vsel %vm397_vm0, %v448_v53, %v3566_v45  ;;  %v459_v53 = vrot.slane %v3598_v33, 1 }
  0x39   : > { %510 = vrot.lane.b32.xlu0 %v3548_v29, %s3286_s20  ;;  %5233 = vst [vmem:[#allocation18_spill] sm:$0xff] %v3594_v21  ;;  %v3622_v29 = vld [vmem:[%s3338_s19 + $0x148] sm:$0x3] }
  0x3a   : > { %v460_v58 = vsel %vm397_vm0, %v458_v8, %v459_v53 }
  0x3c   : > { %516 = vrot.lane.b32.xlu1 %v447_v43, %s3286_s20  ;;  %v3601_v43 = vld [vmem:[%s3338_s19 + $0x130] sm:$0x3] }
  0x3d   : > { %514 = vrot.lane.b32.xlu0 %v3571_v51, %s3286_s20  ;;  %v461_v45 = vrot.slane %v3601_v43, 1  ;;  %v3615_v51 = vsel %vm397_vm0, %v453_v27, %v3589_v9  ;;  %v466_v9 = vrot.slane %v3622_v29, 1 }
  0x3e   : > { %5234 = vst [vmem:[#allocation19_spill] sm:$0xff] %v3615_v51 }
  0x3f   : > { %v462_v16 = vsel %vm397_vm0, %v459_v53, %v461_v45 }
  0x40   : > { %520 = vrot.lane.b32.xlu1 %v452_v6, %s3286_s20  ;;  %v3619_v6 = vld [vmem:[%s3338_s19 + $0x140] sm:$0xff] }
  0x41   : > { %518 = vrot.lane.b32.xlu0 %v3594_v21, %s3286_s20  ;;  %v3625_v21 = vld [vmem:[%s3338_s19 + $0x138] sm:$0xff]  ;;  %v464_v27 = vrot.slane %v3619_v6, 1 }
  0x42   : > { %v463_v13 = vrot.slane %v3625_v21, 1 }
  0x43   : > { %v467_v45 = vsel %vm397_vm0, %v464_v27, %v466_v9  ;;  %v474_v9 = vrot.slane %v3652_v52, 1 }
  0x44   : > { %524 = vrot.lane.b32.xlu1 %v457_v49, %s3286_s20  ;;  %v3642_v49 = vld [vmem:[%s3338_s19 + $0x150] sm:$0xff]  ;;  %v465_v8 = vsel %vm397_vm0, %v463_v13, %v464_v27  ;;  %v473_v27 = vrot.slane %v3658_v44, 1 }
  0x45   : > { %522 = vrot.lane.b32.xlu0 %v3615_v51, %s3286_s20  ;;  %5236 = vst [vmem:[#allocation21_spill] sm:$0xff] %v3642_v49  ;;  %v469_v51 = vrot.slane %v3636_v50, 1  ;;  %v468_v53 = vrot.slane %v3642_v49, 1 }
  0x47   : > { %v470_v13 = vsel %vm397_vm0, %v468_v53, %v469_v51  ;;  %v3678_v53 = vrot.slane %v3344_v1, 2 }
  0x48   : > { %528 = vrot.lane.b32.xlu1 %v462_v16, %s3286_s20  ;;  %v476_v16 = vrot.slane %v3655_v34, 1 }
  0x49   : > { %526 = vrot.lane.b32.xlu0 %v460_v58, %s3286_s20  ;;  %v472_v58 = vsel %vm397_vm0, %v469_v51, %v471_v42  ;;  %v475_v42 = vsel %vm397_vm0, %v473_v27, %v474_v9  ;;  %v593_v27 = vrot.slane %v3395_v23, 2 }
  0x4a   : > { %v477_v26 = vsel %vm397_vm0, %v474_v9, %v476_v16  ;;  %v588_v9 = vrot.slane %v3374_v14, 2 }
  0x4c   : > { %532 = vrot.lane.b32.xlu1 %v467_v45, %s3286_s20  ;;  %v576_v45 = vrot.slane %v3354_v5, 2 }
  0x4d   : > { %530 = vrot.lane.b32.xlu0 %v465_v8, %s3286_s20  ;;  %v578_v8 = vrot.slane %v3363_v10, 2  ;;  %v580_v10 = vrot.slane %v3341_v0, 2 }
  0x4e   : > { %v577_v5 = vsel %vm574_vm1, %v575_v36, %v576_v45  ;;  %v585_v36 = vrot.slane %v3377_v15, 2 }
  0x4f   : > { %v579_v51 = vsel %vm574_vm1, %v576_v45, %v578_v8  ;;  %v590_v45 = vrot.slane %v3398_v24, 2 }
  0x50   : > { %536 = vrot.lane.b32.xlu1 %v472_v58, %s3286_s20  ;;  %v583_v58 = vrot.slane %v3358_v7, 2  ;;  %v3693_v7 = vsel %vm574_vm1, %v580_v10, %v3678_v53  ;;  %v3730_v10 = vrot.slane %v3437_v38, 2 }
  0x51   : > { %534 = vrot.lane.b32.xlu0 %v470_v13, %s3286_s20  ;;  %v3702_v13 = vrot.slane %v3392_v22, 2 }
  0x52   : > { %v584_v2 = vsel %vm574_vm1, %v3678_v53, %v583_v58  ;;  %v595_v58 = vrot.slane %v3420_v32, 2  ;;  %5240 = vst [vmem:[#allocation25_spill] sm:$0xff] %v3730_v10 }
  0x53   : > { %v594_v8 = vsel %vm574_vm1, %v3702_v13, %v593_v27  ;;  %v3721_v23 = vsel %vm574_vm1, %v590_v45, %v3702_v13  ;;  %v608_v27 = vrot.slane %v3463_v47, 2  ;;  %v605_v45 = vrot.slane %v3466_v48, 2 }
  0x54   : > { %540 = vrot.lane.b32.xlu1 %v477_v26, %s3286_s20  ;;  %v3688_v26 = vrot.slane %v3366_v11, 2 }
  0x55   : > { %538 = vrot.lane.b32.xlu0 %v475_v42, %s3286_s20  ;;  %v3716_v42 = vrot.slane %v3414_v30, 2 }
  0x56   : > { %v589_v16 = vsel %vm574_vm1, %v3688_v26, %v588_v9  ;;  %v3707_v14 = vsel %vm574_vm1, %v585_v36, %v3688_v26  ;;  %v600_v9 = vrot.slane %v3443_v40, 2 }
  0x57   : > { %5239 = vst [vmem:[#allocation24_spill] sm:$0xff] %v3716_v42 }
  0x58   : > { %657 = vrot.lane.b32.xlu1 %v579_v51, %s3287_s21  ;;  %v598_v51 = vrot.slane %v3417_v31, 2  ;;  %v3735_v31 = vsel %vm574_vm1, %v595_v58, %v3716_v42  ;;  %v613_v58 = vrot.slane %v3486_v55, 2 }
  0x59   : > { %655 = vrot.lane.b32.xlu0 %v577_v5, %s3287_s21 }
  0x5a   : > { %v599_v5 = vsel %vm574_vm1, %v3716_v42, %v598_v51  ;;  %v3758_v51 = vrot.slane %v3483_v54, 2 }
  0x5c   : > { %661 = vrot.lane.b32.xlu1 %v584_v2, %s3287_s21  ;;  %v603_v2 = vrot.slane %v3440_v39, 2  ;;  %v3749_v39 = vsel %vm574_vm1, %v600_v9, %v3730_v10  ;;  %5243 = vst [vmem:[#allocation28_spill] sm:$0xff] %v3758_v51  ;;  %v3772_v9 = vrot.slane %v3506_v62, 2 }
  0x5d   : > { %659 = vrot.lane.b32.xlu0 %v3693_v7, %s3287_s21  ;;  %5242 = vst [vmem:[#allocation27_spill] sm:$0xff] %v3749_v39 }
  0x5e   : > { %v604_v36 = vsel %vm574_vm1, %v3730_v10, %v603_v2  ;;  %v614_v2 = vsel %vm574_vm1, %v3758_v51, %v613_v58  ;;  %5245 = vst [vmem:[#allocation30_spill] sm:$0xff] %v3772_v9  ;;  %v623_v58 = vrot.slane %v3532_v19, 2 }
  0x60   : > { %665 = vrot.lane.b32.xlu1 %v589_v16, %s3287_s21  ;;  %v3744_v16 = vrot.slane %v3460_v46, 2 }
  0x61   : > { %663 = vrot.lane.b32.xlu0 %v3707_v14, %s3287_s21 }
  0x62   : > { %5241 = vst [vmem:[#allocation26_spill] sm:$0xff] %v3744_v16  ;;  %v3763_v47 = vsel %vm574_vm1, %v605_v45, %v3744_v16 }
  0x63   : > { %5244 = vst [vmem:[#allocation29_spill] sm:$0xff] %v3763_v47 }
  0x64   : > { %669 = vrot.lane.b32.xlu1 %v594_v8, %s3287_s21  ;;  %v609_v8 = vsel %vm574_vm1, %v3744_v16, %v608_v27  ;;  %v615_v27 = vrot.slane %v3512_v3, 2 }
  0x65   : > { %667 = vrot.lane.b32.xlu0 %v3721_v23, %s3287_s21 }
  0x68   : > { %673 = vrot.lane.b32.xlu1 %v599_v5, %s3287_s21  ;;  %v610_v5 = vrot.slane %v3489_v56, 2 }
  0x69   : > { %671 = vrot.lane.b32.xlu0 %v3735_v31, %s3287_s21 }
  0x6a   : > { %v3777_v55 = vsel %vm574_vm1, %v610_v5, %v3758_v51  ;;  %v620_v5 = vrot.slane %v3535_v20, 2  ;;  %v628_v51 = vrot.slane %v3555_v37, 2 }
  0x6b   : > { %5246 = vst [vmem:[#allocation31_spill] sm:$0xff] %v3777_v55 }
  0x6c   : > { %677 = vrot.lane.b32.xlu1 %v604_v36, %s3287_s21  ;;  %v618_v36 = vrot.slane %v3509_v63, 2  ;;  %v3791_v63 = vsel %vm574_vm1, %v615_v27, %v3772_v9  ;;  %v625_v27 = vrot.slane %v3558_v41, 2 }
  0x6d   : > { %675 = vrot.lane.b32.xlu0 %v3749_v39, %s3287_s21  ;;  %5248 = vst [vmem:[#allocation33_spill] sm:$0xff] %v3791_v63 }
  0x6e   : > { %v619_v45 = vsel %vm574_vm1, %v3772_v9, %v618_v36  ;;  %v3800_v36 = vrot.slane %v3552_v35, 2  ;;  %v633_v9 = vrot.slane %v3578_v59, 2 }
  0x70   : > { %681 = vrot.lane.b32.xlu1 %v609_v8, %s3287_s21  ;;  %v3786_v8 = vrot.slane %v3529_v17, 2  ;;  %5249 = vst [vmem:[#allocation34_spill] sm:$0xff] %v3800_v36  ;;  %v3819_v37 = vsel %vm574_vm1, %v625_v27, %v3800_v36  ;;  %v635_v27 = vrot.slane %v3604_v25, 2 }
  0x71   : > { %679 = vrot.lane.b32.xlu0 %v3763_v47, %s3287_s21  ;;  %5252 = vst [vmem:[#allocation37_spill] sm:$0xff] %v3819_v37 }
  0x72   : > { %5247 = vst [vmem:[#allocation32_spill] sm:$0xff] %v3786_v8  ;;  %v3805_v19 = vsel %vm574_vm1, %v620_v5, %v3786_v8  ;;  %v630_v5 = vrot.slane %v3581_v61, 2 }
  0x73   : > { %5250 = vst [vmem:[#allocation35_spill] sm:$0xff] %v3805_v19 }
  0x74   : > { %685 = vrot.lane.b32.xlu1 %v614_v2, %s3287_s21  ;;  %v624_v2 = vsel %vm574_vm1, %v3786_v8, %v623_v58  ;;  %v3814_v58 = vrot.slane %v3575_v57, 2  ;;  %v638_v8 = vrot.slane %v3601_v43, 2  ;;  %v640_v43 = vrot.slane %v3625_v21, 2 }
  0x75   : > { %683 = vrot.lane.b32.xlu0 %v3777_v55, %s3287_s21 }
  0x76   : > { %5251 = vst [vmem:[#allocation36_spill] sm:$0xff] %v3814_v58  ;;  %v3831_v59 = vsel %vm574_vm1, %v630_v5, %v3814_v58 }
  0x77   : > { %5253 = vst [vmem:[#allocation38_spill] sm:$0xff] %v3831_v59 }
  0x78   : > { %689 = vrot.lane.b32.xlu1 %v619_v45, %s3287_s21  ;;  %v629_v45 = vsel %vm574_vm1, %v3800_v36, %v628_v51  ;;  %v636_v51 = vrot.slane %v3598_v33, 2  ;;  %v641_v36 = vrot.slane %v3619_v6, 2 }
  0x79   : > { %687 = vrot.lane.b32.xlu0 %v3791_v63, %s3287_s21 }
  0x7c   : > { %693 = vrot.lane.b32.xlu1 %v624_v2, %s3287_s21  ;;  %v634_v2 = vsel %vm574_vm1, %v3814_v58, %v633_v9  ;;  %v643_v9 = vrot.slane %v3622_v29, 2  ;;  %v648_v58 = vrot.slane %v3639_v60, 2  ;;  %v645_v29 = vrot.slane %v3642_v49, 2 }
  0x7d   : > { %691 = vrot.lane.b32.xlu0 %v3805_v19, %s3287_s21 }
  0x7e   : > { %v644_v5 = vsel %vm574_vm1, %v641_v36, %v643_v9 }
  0x80   : > { %697 = vrot.lane.b32.xlu1 %v629_v45, %s3287_s21  ;;  %v639_v45 = vsel %vm574_vm1, %v636_v51, %v638_v8  ;;  %v642_v8 = vsel %vm574_vm1, %v640_v43, %v641_v36  ;;  %v650_v36 = vrot.slane %v3658_v44, 2 }
  0x81   : > { %695 = vrot.lane.b32.xlu0 %v3819_v37, %s3287_s21  ;;  %v637_v37 = vsel %vm574_vm1, %v635_v27, %v636_v51  ;;  %v651_v51 = vrot.slane %v3652_v52, 2  ;;  %v653_v27 = vrot.slane %v3655_v34, 2 }
  0x83   : > { %v654_v43 = vsel %vm574_vm1, %v651_v51, %v653_v27 }
  0x84   : > { %701 = vrot.lane.b32.xlu1 %v634_v2, %s3287_s21  ;;  %v646_v2 = vrot.slane %v3636_v50, 2  ;;  %v2008_v50 = vld [vmem:[%s5172_s1] sm:$0xff] }
  0x85   : > { %699 = vrot.lane.b32.xlu0 %v3831_v59, %s3287_s21 }
  0x86   : > { %v647_v60 = vsel %vm574_vm1, %v645_v29, %v646_v2 }
  0x88   : > { %705 = vrot.lane.b32.xlu1 %v639_v45, %s3287_s21 }
  0x89   : > { %703 = vrot.lane.b32.xlu0 %v637_v37, %s3287_s21  ;;  %v649_v37 = vsel %vm574_vm1, %v646_v2, %v648_v58  ;;  %v652_v58 = vsel %vm574_vm1, %v650_v36, %v651_v51 }
  0x8a   : > { %v3847_v59 = vpop.permute.xlu1 %482 }
  0x8b   : > { %5254 = vst [vmem:[#allocation39_spill] sm:$0xff] %v3847_v59  ;;  %v3851_v19 = vpop.permute.xlu0 %478 }
  0x8c   : > { %5255 = vst [vmem:[#allocation40_spill] sm:$0xff] %v3851_v19  ;;  %709 = vrot.lane.b32.xlu1 %v644_v5, %s3287_s21  ;;  %v2815_v19 = vld [vmem:[%s3338_s19 + $0x28] sm:$0x3] }
  0x8d   : > { %707 = vrot.lane.b32.xlu0 %v642_v8, %s3287_s21  ;;  %v898_v16 = vrot.slane %v2815_v19, 1  ;;  %v1074_v44 = vrot.slane %v2815_v19, 2 }
  0x8e   : > { %v3858_v45 = vpop.permute.xlu1 %484 }
  0x8f   : > { %5256 = vst [vmem:[#allocation41_spill] sm:$0xff] %v3858_v45  ;;  %v3862_v9 = vpop.permute.xlu0 %480  ;;  %v899_v39 = vsel %vm397_vm0, %v3351_v4, %v898_v16  ;;  %v1075_v42 = vsel %vm574_vm1, %v3678_v53, %v1074_v44  ;;  %v2009_v4 = vld [vmem:[%s5172_s1 + $0x8] sm:$0xff]  ;;  %v2010_v44 = vld [vmem:[%s5172_s1 + $0x10] sm:$0xff]  ;;  %v2945_v53 = vld [vmem:[%s5172_s1 + $0x38] sm:$0xff] }
  0x90   : > { %5257 = vst [vmem:[#allocation42_spill] sm:$0xff] %v3862_v9  ;;  %713 = vrot.lane.b32.xlu1 %v649_v37, %s3287_s21  ;;  %v2943_v16 = vld [vmem:[%s5172_s1 + $0x28] sm:$0xff] }
  0x91   : > { %711 = vrot.lane.b32.xlu0 %v647_v60, %s3287_s21 }
  0x92   : > { %v3867_v5 = vpop.permute.xlu1 %488 }
  0x93   : > { %5258 = vst [vmem:[#allocation43_spill] sm:$0xff] %v3867_v5  ;;  %v3870_v8 = vpop.permute.xlu0 %486 }
  0x94   : > { %5259 = vst [vmem:[#allocation44_spill] sm:$0xff] %v3870_v8  ;;  %717 = vrot.lane.b32.xlu1 %v654_v43, %s3287_s21 }
  0x95   : > { %715 = vrot.lane.b32.xlu0 %v652_v58, %s3287_s21 }
  0x96   : > { %v3874_v34 = vpop.permute.xlu1 %492 }
  0x97   : > { %v3876_v2 = vpop.permute.xlu0 %490 }
  0x98   : > { %5260 = vst [vmem:[#allocation45_spill] sm:$0xff] %v3876_v2  ;;  %785 = vrot.lane.b32.xlu1 %v3344_v1, %s3288_s22 }
  0x99   : > { %783 = vrot.lane.b32.xlu0 %v3341_v0, %s3288_s22 }
  0x9a   : > { %v3882_v29 = vpop.permute.xlu1 %496 }
  0x9b   : > { %v3884_v37 = vpop.permute.xlu0 %494 }
  0x9c   : > { %789 = vrot.lane.b32.xlu1 %v3366_v11, %s3288_s22 }
  0x9d   : > { %787 = vrot.lane.b32.xlu0 %v3377_v15, %s3288_s22 }
  0x9e   : > { %v3890_v51 = vpop.permute.xlu1 %500 }
  0x9f   : > { %v3892_v27 = vpop.permute.xlu0 %498 }
  0xa0   : > { %793 = vrot.lane.b32.xlu1 %v3392_v22, %s3288_s22 }
  0xa1   : > { %791 = vrot.lane.b32.xlu0 %v3398_v24, %s3288_s22 }
  0xa2   : > { %v3898_v0 = vpop.permute.xlu1 %504 }
  0xa3   : > { %v3900_v1 = vpop.permute.xlu0 %502 }
  0xa4   : > { %797 = vrot.lane.b32.xlu1 %v3414_v30, %s3288_s22 }
  0xa5   : > { %795 = vrot.lane.b32.xlu0 %v3420_v32, %s3288_s22 }
  0xa6   : > { %v3906_v60 = vpop.permute.xlu1 %508 }
  0xa7   : > { %v3908_v36 = vpop.permute.xlu0 %506 }
  0xa8   : > { %801 = vrot.lane.b32.xlu1 %v3437_v38, %s3288_s22 }
  0xa9   : > { %799 = vrot.lane.b32.xlu0 %v3443_v40, %s3288_s22 }
  0xaa   : > { %v3914_v43 = vpop.permute.xlu1 %512 }
  0xab   : > { %v3916_v58 = vpop.permute.xlu0 %510 }
  0xac   : > { %805 = vrot.lane.b32.xlu1 %v3460_v46, %s3288_s22 }
  0xad   : > { %803 = vrot.lane.b32.xlu0 %v3466_v48, %s3288_s22 }
  0xae   : > { %v3922_v2 = vpop.permute.xlu1 %516 }
  0xaf   : > { %v3924_v5 = vpop.permute.xlu0 %514 }
  0xb0   : > { %809 = vrot.lane.b32.xlu1 %v3483_v54, %s3288_s22 }
  0xb1   : > { %807 = vrot.lane.b32.xlu0 %v3489_v56, %s3288_s22 }
  0xb2   : > { %v3930_v8 = vpop.permute.xlu1 %520 }
  0xb3   : > { %v3932_v45 = vpop.permute.xlu0 %518 }
  0xb4   : > { %813 = vrot.lane.b32.xlu1 %v3506_v62, %s3288_s22 }
  0xb5   : > { %811 = vrot.lane.b32.xlu0 %v3512_v3, %s3288_s22 }
  0xb6   : > { %v3938_v59 = vpop.permute.xlu1 %524 }
  0xb7   : > { %v3940_v63 = vpop.permute.xlu0 %522 }
  0xb8   : > { %817 = vrot.lane.b32.xlu1 %v3529_v17, %s3288_s22 }
  0xb9   : > { %815 = vrot.lane.b32.xlu0 %v3535_v20, %s3288_s22 }
  0xba   : > { %v3946_v9 = vpop.permute.xlu1 %528 }
  0xbb   : > { %v3949_v55 = vpop.permute.xlu0 %526 }
  0xbc   : > { %821 = vrot.lane.b32.xlu1 %v3552_v35, %s3288_s22 }
  0xbd   : > { %819 = vrot.lane.b32.xlu0 %v3558_v41, %s3288_s22 }
  0xbe   : > { %v3955_v47 = vpop.permute.xlu1 %532 }
  0xbf   : > { %v3957_v10 = vpop.permute.xlu0 %530 }
  0xc0   : > { %825 = vrot.lane.b32.xlu1 %v3575_v57, %s3288_s22 }
  0xc1   : > { %823 = vrot.lane.b32.xlu0 %v3581_v61, %s3288_s22 }
  0xc2   : > { %v3965_v52 = vpop.permute.xlu1 %536 }
  0xc3   : > { %5261 = vst [vmem:[#allocation46_spill] sm:$0xff] %v3965_v52  ;;  %v3967_v49 = vpop.permute.xlu0 %534 }
  0xc4   : > { %5262 = vst [vmem:[#allocation47_spill] sm:$0xff] %v3967_v49  ;;  %977 = vrot.lane.b32.xlu1 %v899_v39, %s3289_s23  ;;  %v3206_v39 = vpack.c.bf16 %v2009_v4, %v2008_v50  ;;  %v2944_v49 = vld [vmem:[%s5172_s1 + $0x30] sm:$0xff]  ;;  %v2011_v50 = vld [vmem:[%s5172_s1 + $0x18] sm:$0xff] }
  0xc5   : > { %975 = vrot.lane.b32.xlu0 %v3370_v12, %s3289_s23  ;;  %v3214_v12 = vpack.c.bf16 %v2944_v49, %v2943_v16  ;;  %v3210_v49 = vpack.c.bf16 %v2011_v50, %v2010_v44 }
  0xc6   : > { %v3983_v19 = vpop.permute.xlu1 %540  ;;  %3207 = vmatprep.subr.bf16.mxu0 %v3206_v39 }
  0xc7   : > { %5263 = vst [vmem:[#allocation48_spill] sm:$0xff] %v3983_v19  ;;  %v3988_v52 = vpop.permute.xlu0 %538  ;;  %3215 = vmatprep.subr.bf16.mxu1 %v3214_v12  ;;  %3209 = vmatpush3.bf16.msra.mxu0 %v3206_v39  ;;  %v2863_v19 = vld [vmem:[%s3338_s19 + $0x40] sm:$0x3]  ;;  %v2947_v39 = vld [vmem:[%s5172_s1 + $0x48] sm:$0xf] }
  0xc8   : > { %5264 = vst [vmem:[#allocation49_spill] sm:$0xff] %v3988_v52  ;;  %1153 = vrot.lane.b32.xlu1 %v1075_v42, %s3290_s5  ;;  %v2946_v42 = vld [vmem:[%s5172_s1 + $0x40] sm:$0xff]  ;;  %3217 = vmatpush3.bf16.msra.mxu1 %v3214_v12  ;;  %v1394_v44 = vrot.slane %v2863_v19, 1 }
  0xc9   : > { %1151 = vrot.lane.b32.xlu0 %v3693_v7, %s3290_s5  ;;  %v3218_v16 = vpack.c.bf16 %v2946_v42, %v2945_v53  ;;  %3211 = vmatprep.subr.bf16.mxu0 %v3210_v49  ;;  %v2012_v7 = vld [vmem:[%s5172_s1 + $0x20] sm:$0xf] }
  0xca   : > { %v4005_v4 = vpop.permute.xlu1 %657  ;;  %v1395_v53 = vsel %vm397_vm0, %v3386_v18, %v1394_v44 }
  0xcb   : > { %v4007_v52 = vpop.permute.xlu0 %655  ;;  %3219 = vmatprep.subr.bf16.mxu1 %v3218_v16  ;;  %3213 = vmatpush3.bf16.msra.mxu0 %v3210_v49 }
  0xcc   : > { %1281 = vrot.lane.b32.xlu1 %v3366_v11, %s3291_s18  ;;  %3221 = vmatpush3.bf16.msra.mxu1 %v3218_v16  ;;  %v2818_v11 = vld [vmem:[%s3338_s19 + $0x40] sm:$0x3]  ;;  %v1751_v16 = vsel %vm1743_vm3, %v3392_v22, %v3874_v34 }
  0xcd   : > { %1279 = vrot.lane.b32.xlu0 %v3377_v15, %s3291_s18  ;;  %3098 = vmatprep.subr.msk.mxu0 %vm2116_vm2, %v2012_v7  ;;  %v903_v49 = vrot.slane %v2818_v11, 1 }
  0xce   : > { %v4020_v12 = vpop.permute.xlu1 %661  ;;  %3156 = vmatprep.subr.msk.mxu1 %vm2116_vm2, %v2947_v39 }
  0xcf   : > { %v4022_v50 = vpop.permute.xlu0 %659  ;;  %3099 = vmatpush3.msk.msra.mxu0 %vm2116_vm2, %v2012_v7  ;;  %v904_v7 = vsel %vm397_vm0, %v3386_v18, %v903_v49 }
  0xd0   : > { %979 = vrot.lane.b32.xlu1 %v3410_v28, %s3289_s23  ;;  %3157 = vmatpush3.msk.msra.mxu1 %vm2116_vm2, %v2947_v39  ;;  %v1570_v39 = vrot.slane %v2863_v19, 2 }
  0xd1   : > { %1471 = vrot.lane.b32.xlu0 %v3410_v28, %s3292_s26  ;;  %v1079_v28 = vrot.slane %v2818_v11, 2  ;;  %v1753_v11 = vsel %vm1743_vm3, %v3414_v30, %v3882_v29 }
  0xd2   : > { %v4031_v15 = vpop.permute.xlu1 %665  ;;  %v1571_v19 = vsel %vm574_vm1, %v3688_v26, %v1570_v39 }
  0xd3   : > { %5265 = vst [vmem:[#allocation50_spill] sm:$0xff] %v4031_v15  ;;  %v4037_v42 = vpop.permute.xlu0 %663  ;;  %v1080_v34 = vsel %vm574_vm1, %v3688_v26, %v1079_v28  ;;  %v1755_v26 = vsel %vm1743_vm3, %v3437_v38, %v3890_v51  ;;  %v1757_v38 = vsel %vm1743_vm3, %v3460_v46, %v3898_v0  ;;  %v1759_v46 = vsel %vm1743_vm3, %v3483_v54, %v3906_v60 }
  0xd4   : > { %5266 = vst [vmem:[#allocation51_spill] sm:$0xff] %v4037_v42  ;;  %1647 = vrot.lane.b32.xlu1 %v3707_v14, %s3293_s27  ;;  %v1761_v60 = vsel %vm1743_vm3, %v3506_v62, %v3914_v43 }
  0xd5   : > { %1473 = vrot.lane.b32.xlu0 %v1395_v53, %s3292_s26  ;;  %v1752_v53 = vsel %vm1743_vm3, %v3420_v32, %v3884_v37  ;;  %v1754_v37 = vsel %vm1743_vm3, %v3443_v40, %v3892_v27  ;;  %v1756_v27 = vsel %vm1743_vm3, %v3466_v48, %v3900_v1  ;;  %v5268_v48 = vld [vmem:[#allocation2_spill] sm:$0xff] }
  0xd6   : > { %v670_v44 = vpop.permute.xlu1 %669 }
  0xd7   : > { %v4048_v15 = vsel %vm1776_vm4, %v1751_v16, %v670_v44  ;;  %v4050_v42 = vpop.permute.xlu0 %667 }
  0xd8   : > { %1155 = vrot.lane.b32.xlu1 %v3707_v14, %s3290_s5 }
  0xd9   : > { %981 = vrot.lane.b32.xlu0 %v904_v7, %s3289_s23  ;;  %v2866_v7 = vld [vmem:[%s3338_s19 + $0x58] sm:$0x3] }
  0xda   : > { %v674_v18 = vpop.permute.xlu1 %673  ;;  %v1399_v40 = vrot.slane %v2866_v7, 1 }
  0xdb   : > { %v4066_v14 = vsel %vm1776_vm4, %v1753_v11, %v674_v18  ;;  %v672_v49 = vpop.permute.xlu0 %671  ;;  %v2821_v18 = vld [vmem:[%s3338_s19 + $0x58] sm:$0x3] }
  0xdc   : > { %v4069_v16 = vsel %vm1776_vm4, %v1752_v53, %v672_v49  ;;  %1157 = vrot.lane.b32.xlu1 %v1080_v34, %s3290_s5  ;;  %v1400_v1 = vsel %vm397_vm0, %v5268_v48, %v1399_v40  ;;  %v1758_v53 = vsel %vm1743_vm3, %v3489_v56, %v3908_v36  ;;  %v1084_v54 = vrot.slane %v2821_v18, 2 }
  0xdd   : > { %1649 = vrot.lane.b32.xlu0 %v1571_v19, %s3293_s27  ;;  %v908_v19 = vrot.slane %v2821_v18, 1  ;;  %v1575_v36 = vrot.slane %v2866_v7, 2  ;;  %v1762_v7 = vsel %vm1743_vm3, %v3535_v20, %v3924_v5  ;;  %v1764_v20 = vsel %vm1743_vm3, %v3558_v41, %v3932_v45  ;;  %v2869_v18 = vld [vmem:[%s3338_s19 + $0x70] sm:$0x3] }
  0xde   : > { %v678_v29 = vpop.permute.xlu1 %677  ;;  %v1085_v62 = vsel %vm574_vm1, %v3702_v13, %v1084_v54  ;;  %v1404_v41 = vrot.slane %v2869_v18, 1  ;;  %v1766_v45 = vsel %vm1743_vm3, %v3581_v61, %v3940_v63  ;;  %v5271_v61 = vld [vmem:[#allocation3_spill] sm:$0xff] }
  0xdf   : > { %v4080_v28 = vsel %vm1776_vm4, %v1755_v26, %v678_v29  ;;  %v676_v44 = vpop.permute.xlu0 %675  ;;  %v909_v56 = vsel %vm397_vm0, %v5268_v48, %v908_v19  ;;  %v2824_v48 = vld [vmem:[%s3338_s19 + $0x70] sm:$0x3]  ;;  %v1768_v19 = vsel %vm1743_vm3, %v3604_v25, %v3949_v55  ;;  %v1580_v55 = vrot.slane %v2869_v18, 2  ;;  %v5284_v18 = vld [vmem:[#allocation22_spill] sm:$0xff] }
  0xe0   : > { %v4084_v39 = vsel %vm1776_vm4, %v1754_v37, %v676_v44  ;;  %1285 = vrot.lane.b32.xlu1 %v3392_v22, %s3291_s18  ;;  %v1760_v44 = vsel %vm1743_vm3, %v3512_v3, %v3916_v58  ;;  %v1763_v3 = vsel %vm1743_vm3, %v3529_v17, %v3922_v2  ;;  %v1576_v58 = vsel %vm574_vm1, %v3702_v13, %v1575_v36 }
  0xe1   : > { %1283 = vrot.lane.b32.xlu0 %v3398_v24, %s3291_s18  ;;  %v5267_v24 = vld [vmem:[#allocation4_spill] sm:$0xff]  ;;  %v1765_v17 = vsel %vm1743_vm3, %v3552_v35, %v3930_v8  ;;  %v1767_v35 = vsel %vm1743_vm3, %v3575_v57, %v3938_v59  ;;  %v1769_v57 = vsel %vm1743_vm3, %v3598_v33, %v3946_v9  ;;  %v1405_v63 = vsel %vm397_vm0, %v5271_v61, %v1404_v41 }
  0xe2   : > { %v682_v51 = vpop.permute.xlu1 %681  ;;  %v1089_v33 = vrot.slane %v2824_v48, 2  ;;  %v1771_v9 = vsel %vm1743_vm3, %v3619_v6, %v3955_v47  ;;  %v5276_v6 = vld [vmem:[#allocation24_spill] sm:$0xff] }
  0xe3   : > { %v4097_v34 = vsel %vm1776_vm4, %v1757_v38, %v682_v51  ;;  %v680_v11 = vpop.permute.xlu0 %679 }
  0xe4   : > { %v4101_v22 = vsel %vm1776_vm4, %v1756_v27, %v680_v11  ;;  %983 = vrot.lane.b32.xlu1 %v5267_v24, %s3289_s23  ;;  %v1090_v47 = vsel %vm574_vm1, %v5276_v6, %v1089_v33 }
  0xe5   : > { %1475 = vrot.lane.b32.xlu0 %v5267_v24, %s3292_s26 }
  0xe6   : > { %v686_v0 = vpop.permute.xlu1 %685 }
  0xe7   : > { %v4116_v49 = vsel %vm1776_vm4, %v1759_v46, %v686_v0  ;;  %v684_v26 = vpop.permute.xlu0 %683 }
  0xe8   : > { %v4119_v29 = vsel %vm1776_vm4, %v1758_v53, %v684_v26  ;;  %1651 = vrot.lane.b32.xlu1 %v3721_v23, %s3293_s27 }
  0xe9   : > { %1477 = vrot.lane.b32.xlu0 %v1400_v1, %s3292_s26  ;;  %v913_v1 = vrot.slane %v2824_v48, 1  ;;  %v5286_v48 = vld [vmem:[#allocation23_spill] sm:$0xff] }
  0xea   : > { %v690_v37 = vpop.permute.xlu1 %689 }
  0xeb   : > { %v4133_v38 = vsel %vm1776_vm4, %v1761_v60, %v690_v37  ;;  %v688_v51 = vpop.permute.xlu0 %687  ;;  %v914_v25 = vsel %vm397_vm0, %v5271_v61, %v913_v1  ;;  %v1770_v37 = vsel %vm1743_vm3, %v3625_v21, %v3957_v10  ;;  %v1581_v10 = vsel %vm574_vm1, %v5276_v6, %v1580_v55  ;;  %v2872_v61 = vld [vmem:[%s3338_s19 + $0x88] sm:$0x3]  ;;  %v5289_v55 = vld [vmem:[#allocation8_spill] sm:$0xff] }
  0xec   : > { %v4136_v40 = vsel %vm1776_vm4, %v1760_v44, %v688_v51  ;;  %1159 = vrot.lane.b32.xlu1 %v3721_v23, %s3290_s5  ;;  %v5277_v51 = vld [vmem:[#allocation46_spill] sm:$0xff] }
  0xed   : > { %985 = vrot.lane.b32.xlu0 %v909_v56, %s3289_s23 }
  0xee   : > { %v694_v43 = vpop.permute.xlu1 %693 }
  0xef   : > { %v4152_v23 = vsel %vm1776_vm4, %v1763_v3, %v694_v43  ;;  %v692_v27 = vpop.permute.xlu0 %691  ;;  %v5279_v43 = vld [vmem:[#allocation47_spill] sm:$0xff] }
  0xf0   : > { %v4155_v11 = vsel %vm1776_vm4, %v1762_v7, %v692_v27  ;;  %1161 = vrot.lane.b32.xlu1 %v1085_v62, %s3290_s5  ;;  %v5278_v62 = vld [vmem:[#allocation20_spill] sm:$0xff] }
  0xf1   : > { %1653 = vrot.lane.b32.xlu0 %v1576_v58, %s3293_s27  ;;  %v1773_v3 = vsel %vm1743_vm3, %v5278_v62, %v5277_v51  ;;  %v5280_v58 = vld [vmem:[#allocation21_spill] sm:$0xff] }
  0xf2   : > { %v698_v13 = vpop.permute.xlu1 %697  ;;  %v1772_v7 = vsel %vm1743_vm3, %v5280_v58, %v5279_v43  ;;  %v1585_v43 = vrot.slane %v2872_v61, 2 }
  0xf3   : > { %v4166_v5 = vsel %vm1776_vm4, %v1765_v17, %v698_v13  ;;  %v696_v2 = vpop.permute.xlu0 %695  ;;  %v2871_v17 = vld [vmem:[%s3338_s19 + $0x80] sm:$0xff]  ;;  %v2870_v13 = vld [vmem:[%s3338_s19 + $0x78] sm:$0xff] }
  0xf4   : > { %v4170_v24 = vsel %vm1776_vm4, %v1764_v20, %v696_v2  ;;  %1289 = vrot.lane.b32.xlu1 %v3414_v30, %s3291_s18  ;;  %v5283_v2 = vld [vmem:[#allocation48_spill] sm:$0xff]  ;;  %v1407_v41 = vrot.slane %v2871_v17, 1  ;;  %v1583_v1 = vrot.slane %v2871_v17, 2 }
  0xf5   : > { %1287 = vrot.lane.b32.xlu0 %v3420_v32, %s3291_s18  ;;  %v5270_v32 = vld [vmem:[#allocation6_spill] sm:$0xff] }
  0xf6   : > { %v702_v8 = vpop.permute.xlu1 %701 }
  0xf7   : > { %v4183_v46 = vsel %vm1776_vm4, %v1767_v35, %v702_v8  ;;  %v700_v0 = vpop.permute.xlu0 %699  ;;  %v1775_v35 = vsel %vm1743_vm3, %v5284_v18, %v5283_v2  ;;  %v1586_v2 = vsel %vm574_vm1, %v1583_v1, %v1585_v43 }
  0xf8   : > { %5269 = vst [vmem:[#allocation4_spill] sm:$0xff] %v4183_v46  ;;  %v4187_v30 = vsel %vm1776_vm4, %v1766_v45, %v700_v0  ;;  %987 = vrot.lane.b32.xlu1 %v5270_v32, %s3289_s23  ;;  %v1406_v45 = vrot.slane %v2870_v13, 1  ;;  %v5285_v0 = vld [vmem:[#allocation49_spill] sm:$0xff]  ;;  %v5302_v46 = vld [vmem:[#allocation14_spill] sm:$0xff] }
  0xf9   : > { %1479 = vrot.lane.b32.xlu0 %v5270_v32, %s3292_s26  ;;  %v1774_v32 = vsel %vm1743_vm3, %v5286_v48, %v5285_v0 }
  0xfa   : > { %v706_v59 = vpop.permute.xlu1 %705  ;;  %v1408_v33 = vsel %vm397_vm0, %v1406_v45, %v1407_v41 }
  0xfb   : > { %v4202_v53 = vsel %vm1776_vm4, %v1769_v57, %v706_v59  ;;  %v704_v26 = vpop.permute.xlu0 %703 }
  0xfc   : > { %5272 = vst [vmem:[#allocation2_spill] sm:$0xff] %v4202_v53  ;;  %v4205_v54 = vsel %vm1776_vm4, %v1768_v19, %v704_v26  ;;  %1655 = vrot.lane.b32.xlu1 %v3735_v31, %s3293_s27  ;;  %v1582_v19 = vrot.slane %v2870_v13, 2  ;;  %v2879_v53 = vld [vmem:[%s3338_s19 + $0xc0] sm:$0xff] }
  0xfd   : > { %5273 = vst [vmem:[#allocation6_spill] sm:$0xff] %v4205_v54  ;;  %1481 = vrot.lane.b32.xlu0 %v1405_v63, %s3292_s26  ;;  %v2836_v54 = vld [vmem:[%s3338_s19 + $0xd0] sm:$0x3] }
  0xfe   : > { %v710_v60 = vpop.permute.xlu1 %709 }
  0xff   : > { %v4219_v56 = vsel %vm1776_vm4, %v1771_v9, %v710_v60  ;;  %v708_v36 = vpop.permute.xlu0 %707  ;;  %v1409_v9 = vrot.slane %v2872_v61, 1 }
 0x100   : > { %5274 = vst [vmem:[#allocation3_spill] sm:$0xff] %v4219_v56  ;;  %v4222_v44 = vsel %vm1776_vm4, %v1770_v37, %v708_v36  ;;  %1163 = vrot.lane.b32.xlu1 %v3735_v31, %s3290_s5  ;;  %v1584_v37 = vsel %vm574_vm1, %v1582_v19, %v1583_v1  ;;  %v5299_v56 = vld [vmem:[#allocation31_spill] sm:$0xff] }
 0x101   : > { %5275 = vst [vmem:[#allocation52_spill] sm:$0xff] %v4222_v44  ;;  %989 = vrot.lane.b32.xlu0 %v914_v25, %s3289_s23  ;;  %v2827_v25 = vld [vmem:[%s3338_s19 + $0x88] sm:$0x3]  ;;  %v1410_v6 = vsel %vm397_vm0, %v1407_v41, %v1409_v9 }
 0x102   : > { %v714_v21 = vpop.permute.xlu1 %713  ;;  %v1094_v62 = vrot.slane %v2827_v25, 2 }
 0x103   : > { %v4238_v31 = vsel %vm1776_vm4, %v1773_v3, %v714_v21  ;;  %v712_v27 = vpop.permute.xlu0 %711  ;;  %v5290_v21 = vld [vmem:[#allocation5_spill] sm:$0xff] }
 0x104   : > { %5281 = vst [vmem:[#allocation24_spill] sm:$0xff] %v4238_v31  ;;  %v4243_v20 = vsel %vm1776_vm4, %v1772_v7, %v712_v27  ;;  %1165 = vrot.lane.b32.xlu1 %v1090_v47, %s3290_s5  ;;  %v918_v47 = vrot.slane %v2827_v25, 1  ;;  %v5291_v7 = vld [vmem:[#allocation27_spill] sm:$0xff]  ;;  %v5292_v27 = vld [vmem:[#allocation25_spill] sm:$0xff]  ;;  %v2830_v25 = vld [vmem:[%s3338_s19 + $0xa0] sm:$0x3] }
 0x105   : > { %5282 = vst [vmem:[#allocation46_spill] sm:$0xff] %v4243_v20  ;;  %1657 = vrot.lane.b32.xlu0 %v1581_v10, %s3293_s27 }
 0x106   : > { %v718_v8 = vpop.permute.xlu1 %717  ;;  %v919_v10 = vsel %vm397_vm0, %v5290_v21, %v918_v47 }
 0x107   : > { %v4254_v57 = vsel %vm1776_vm4, %v1775_v35, %v718_v8  ;;  %v716_v59 = vpop.permute.xlu0 %715  ;;  %v2874_v35 = vld [vmem:[%s3338_s19 + $0x98] sm:$0xff]  ;;  %v2873_v8 = vld [vmem:[%s3338_s19 + $0x90] sm:$0xff] }
 0x108   : > { %5287 = vst [vmem:[#allocation20_spill] sm:$0xff] %v4254_v57  ;;  %v4258_v63 = vsel %vm1776_vm4, %v1774_v32, %v716_v59  ;;  %1293 = vrot.lane.b32.xlu1 %v2871_v17, %s3291_s18  ;;  %v1095_v17 = vsel %vm574_vm1, %v5292_v27, %v1094_v62  ;;  %v1412_v45 = vrot.slane %v2874_v35, 1  ;;  %v1411_v0 = vrot.slane %v2873_v8, 1  ;;  %v2875_v32 = vld [vmem:[%s3338_s19 + $0xa0] sm:$0x3] }
 0x109   : > { %5288 = vst [vmem:[#allocation47_spill] sm:$0xff] %v4258_v63  ;;  %1291 = vrot.lane.b32.xlu0 %v2870_v13, %s3291_s18  ;;  %v1588_v59 = vrot.slane %v2874_v35, 2  ;;  %v1587_v61 = vrot.slane %v2873_v8, 2  ;;  %v923_v62 = vrot.slane %v2830_v25, 1 }
 0x10a   : > { %v4262_v26 = vpop.permute.xlu1 %785  ;;  %v1413_v19 = vsel %vm397_vm0, %v1411_v0, %v1412_v45 }
 0x10b   : > { %v4265_v60 = vpop.permute.xlu0 %783 }
 0x10c   : > { %991 = vrot.lane.b32.xlu1 %v5289_v55, %s3289_s23  ;;  %v5293_v55 = vld [vmem:[#allocation10_spill] sm:$0xff] }
 0x10d   : > { %1483 = vrot.lane.b32.xlu0 %v1408_v33, %s3292_s26  ;;  %v1414_v33 = vrot.slane %v2875_v32, 1 }
 0x10e   : > { %v4272_v36 = vpop.permute.xlu1 %789 }
 0x10f   : > { %v4275_v51 = vpop.permute.xlu0 %787  ;;  %v1415_v47 = vsel %vm397_vm0, %v1412_v45, %v1414_v33  ;;  %v2877_v33 = vld [vmem:[%s3338_s19 + $0xb0] sm:$0xff] }
 0x110   : > { %1659 = vrot.lane.b32.xlu1 %v1584_v37, %s3293_s27  ;;  %v1589_v37 = vsel %vm574_vm1, %v1587_v61, %v1588_v59 }
 0x111   : > { %1485 = vrot.lane.b32.xlu0 %v1410_v6, %s3292_s26 }
 0x112   : > { %v4279_v3 = vpop.permute.xlu1 %793 }
 0x113   : > { %v4283_v58 = vpop.permute.xlu0 %791 }
 0x114   : > { %1167 = vrot.lane.b32.xlu1 %v5291_v7, %s3290_s5  ;;  %v5294_v7 = vld [vmem:[#allocation7_spill] sm:$0xff] }
 0x115   : > { %993 = vrot.lane.b32.xlu0 %v919_v10, %s3289_s23  ;;  %v1099_v10 = vrot.slane %v2830_v25, 2  ;;  %v924_v27 = vsel %vm397_vm0, %v5294_v7, %v923_v62  ;;  %v2876_v25 = vld [vmem:[%s3338_s19 + $0xa8] sm:$0xff]  ;;  %v2878_v62 = vld [vmem:[%s3338_s19 + $0xb8] sm:$0x3] }
 0x116   : > { %v4290_v13 = vpop.permute.xlu1 %797  ;;  %v1595_v20 = vrot.slane %v2878_v62, 2 }
 0x117   : > { %v4293_v18 = vpop.permute.xlu0 %795 }
 0x118   : > { %1169 = vrot.lane.b32.xlu1 %v1095_v17, %s3290_s5  ;;  %v1590_v17 = vrot.slane %v2875_v32, 2 }
 0x119   : > { %1661 = vrot.lane.b32.xlu0 %v1586_v2, %s3293_s27 }
 0x11a   : > { %v4299_v41 = vpop.permute.xlu1 %801  ;;  %v1591_v61 = vsel %vm574_vm1, %v1588_v59, %v1590_v17  ;;  %v1592_v59 = vrot.slane %v2876_v25, 2  ;;  %v1419_v17 = vrot.slane %v2878_v62, 1  ;;  %v5301_v62 = vld [vmem:[#allocation40_spill] sm:$0xff] }
 0x11b   : > { %v4301_v48 = vpop.permute.xlu0 %799 }
 0x11c   : > { %1297 = vrot.lane.b32.xlu1 %v2874_v35, %s3291_s18  ;;  %v5295_v35 = vld [vmem:[#allocation29_spill] sm:$0xff] }
 0x11d   : > { %1295 = vrot.lane.b32.xlu0 %v2873_v8, %s3291_s18  ;;  %v5296_v8 = vld [vmem:[#allocation26_spill] sm:$0xff] }
 0x11e   : > { %v4306_v1 = vpop.permute.xlu1 %805  ;;  %v1100_v45 = vsel %vm574_vm1, %v5296_v8, %v1099_v10  ;;  %v1593_v10 = vrot.slane %v2877_v33, 2  ;;  %v2833_v8 = vld [vmem:[%s3338_s19 + $0xb8] sm:$0x3] }
 0x11f   : > { %v4309_v9 = vpop.permute.xlu0 %803 }
 0x120   : > { %995 = vrot.lane.b32.xlu1 %v5293_v55, %s3289_s23  ;;  %v1417_v55 = vrot.slane %v2877_v33, 1 }
 0x121   : > { %1487 = vrot.lane.b32.xlu0 %v1413_v19, %s3292_s26 }
 0x122   : > { %v4316_v6 = vpop.permute.xlu1 %809 }
 0x123   : > { %v4319_v21 = vpop.permute.xlu0 %807 }
 0x124   : > { %1663 = vrot.lane.b32.xlu1 %v1589_v37, %s3293_s27  ;;  %v1416_v37 = vrot.slane %v2876_v25, 1 }
 0x125   : > { %1489 = vrot.lane.b32.xlu0 %v1415_v47, %s3292_s26 }
 0x126   : > { %v4323_v43 = vpop.permute.xlu1 %813 }
 0x127   : > { %v4327_v2 = vpop.permute.xlu0 %811 }
 0x128   : > { %1171 = vrot.lane.b32.xlu1 %v5295_v35, %s3290_s5 }
 0x129   : > { %997 = vrot.lane.b32.xlu0 %v924_v27, %s3289_s23  ;;  %v1418_v27 = vsel %vm397_vm0, %v1416_v37, %v1417_v55  ;;  %v1104_v37 = vrot.slane %v2833_v8, 2 }
 0x12a   : > { %v4334_v0 = vpop.permute.xlu1 %817 }
 0x12b   : > { %v4337_v19 = vpop.permute.xlu0 %815 }
 0x12c   : > { %1173 = vrot.lane.b32.xlu1 %v1100_v45, %s3290_s5  ;;  %v5297_v45 = vld [vmem:[#allocation12_spill] sm:$0xff] }
 0x12d   : > { %1665 = vrot.lane.b32.xlu0 %v1591_v61, %s3293_s27  ;;  %v1594_v61 = vsel %vm574_vm1, %v1592_v59, %v1593_v10 }
 0x12e   : > { %v4343_v32 = vpop.permute.xlu1 %821 }
 0x12f   : > { %v4345_v47 = vpop.permute.xlu0 %819 }
 0x130   : > { %1301 = vrot.lane.b32.xlu1 %v2877_v33, %s3291_s18  ;;  %v1420_v33 = vsel %vm397_vm0, %v1417_v55, %v1419_v17  ;;  %v5300_v55 = vld [vmem:[#allocation28_spill] sm:$0xff] }
 0x131   : > { %1299 = vrot.lane.b32.xlu0 %v2876_v25, %s3291_s18  ;;  %v928_v25 = vrot.slane %v2833_v8, 1  ;;  %v1105_v17 = vsel %vm574_vm1, %v5300_v55, %v1104_v37  ;;  %v4374_v8 = vld [vmem:[%s3338_s19 + $0xc8] sm:$0xff] }
 0x132   : > { %v4350_v7 = vpop.permute.xlu1 %825  ;;  %v1422_v37 = vrot.slane %v4374_v8, 1 }
 0x133   : > { %v4353_v35 = vpop.permute.xlu0 %823 }
 0x134   : > { %999 = vrot.lane.b32.xlu1 %v5297_v45, %s3289_s23  ;;  %v5298_v45 = vld [vmem:[#allocation9_spill] sm:$0xff] }
 0x135   : > { %1491 = vrot.lane.b32.xlu0 %v1418_v27, %s3292_s26  ;;  %v929_v27 = vsel %vm397_vm0, %v5298_v45, %v928_v25  ;;  %v3255_v25 = vld [vmem:[%s3338_s19] sm:$0xff] }
 0x136   : > { %v4360_v63 = vpop.permute.xlu1 %977  ;;  %v1744_v45 = vsel %vm1743_vm3, %v3255_v25, %v5301_v62  ;;  %v1598_v62 = vrot.slane %v4374_v8, 2 }
 0x137   : > { %v976_v57 = vpop.permute.xlu0 %975 }
 0x138   : > { %1667 = vrot.lane.b32.xlu1 %v1594_v61, %s3293_s27  ;;  %v1596_v61 = vsel %vm574_vm1, %v1593_v10, %v1595_v20 }
 0x139   : > { %1493 = vrot.lane.b32.xlu0 %v1420_v33, %s3292_s26 }
 0x13a   : > { %v1154_v31 = vpop.permute.xlu1 %1153 }
 0x13b   : > { %v1152_v59 = vpop.permute.xlu0 %1151 }
 0x13c   : > { %1175 = vrot.lane.b32.xlu1 %v5299_v56, %s3290_s5  ;;  %v1777_v56 = vsel %vm1776_vm4, %v1744_v45, %v4007_v52 }
 0x13d   : > { %1001 = vrot.lane.b32.xlu0 %v929_v27, %s3289_s23  ;;  %v1810_v20 = vsel %vm1809_vm5, %v1777_v56, %v4265_v60  ;;  %v1421_v27 = vrot.slane %v2879_v53, 1 }
 0x13e   : > { %v1282_v44 = vpop.permute.xlu1 %1281  ;;  %v1843_v55 = vsel %vm1842_vm6, %v1810_v20, %v976_v57 }
 0x13f   : > { %v1280_v33 = vpop.permute.xlu0 %1279  ;;  %v1876_v52 = vsel %vm1875_vm7, %v1843_v55, %v1152_v59  ;;  %v1423_v56 = vsel %vm397_vm0, %v1421_v27, %v1422_v37 }
 0x140   : > { %1177 = vrot.lane.b32.xlu1 %v1105_v17, %s3290_s5  ;;  %v2881_v17 = vld [vmem:[%s3338_s19 + $0xd0] sm:$0x3]  ;;  %v1909_v60 = vsel %vm1908_vm8, %v1876_v52, %v1280_v33  ;;  %v3256_v33 = vld [vmem:[%s3338_s19 + $0x8] sm:$0xff] }
 0x141   : > { %1669 = vrot.lane.b32.xlu0 %v1596_v61, %s3293_s27  ;;  %v1597_v61 = vrot.slane %v2879_v53, 2  ;;  %v1424_v20 = vrot.slane %v2881_v17, 1 }
 0x142   : > { %v4386_v10 = vpop.permute.xlu1 %979 }
 0x143   : > { %v1472_v25 = vpop.permute.xlu0 %1471  ;;  %v1599_v27 = vsel %vm574_vm1, %v1597_v61, %v1598_v62  ;;  %v1109_v61 = vrot.slane %v2836_v54, 2 }
 0x144   : > { %1305 = vrot.lane.b32.xlu1 %v4374_v8, %s3291_s18  ;;  %v1942_v57 = vsel %vm1941_vm9, %v1909_v60, %v1472_v25  ;;  %v5303_v8 = vld [vmem:[#allocation42_spill] sm:$0xff]  ;;  %v1425_v60 = vsel %vm397_vm0, %v1422_v37, %v1424_v20  ;;  %v5304_v20 = vld [vmem:[#allocation11_spill] sm:$0xff] }
 0x145   : > { %1303 = vrot.lane.b32.xlu0 %v2879_v53, %s3291_s18  ;;  %v1745_v53 = vsel %vm1743_vm3, %v3256_v33, %v5303_v8 }
 0x146   : > { %v1648_v45 = vpop.permute.xlu1 %1647  ;;  %v1778_v25 = vsel %vm1776_vm4, %v1745_v53, %v4005_v4 }
 0x147   : > { %v1474_v59 = vpop.permute.xlu0 %1473  ;;  %v1975_v55 = vsel %vm1974_vm10, %v1942_v57, %v1648_v45  ;;  %v933_v57 = vrot.slane %v2836_v54, 1  ;;  %v5306_v54 = vld [vmem:[#allocation30_spill] sm:$0xff] }
 0x148   : > { %1003 = vrot.lane.b32.xlu1 %v5302_v46, %s3289_s23  ;;  %3100 = vmatprep.mubr.msk.f32.mxu0 %vm2019_vm11, %v1975_v55  ;;  %v1811_v46 = vsel %vm1809_vm5, %v1778_v25, %v4262_v26  ;;  %v2883_v25 = vld [vmem:[%s3338_s19 + $0xe0] sm:$0xff] }
 0x149   : > { %1495 = vrot.lane.b32.xlu0 %v1423_v56, %s3292_s26  ;;  %3158 = vmatprep.mubr.msk.f32.mxu1 %vm2019_vm11, %v1975_v55  ;;  %v1844_v33 = vsel %vm1842_vm6, %v1811_v46, %v4360_v63  ;;  %v934_v26 = vsel %vm397_vm0, %v5304_v20, %v933_v57  ;;  %v1600_v55 = vrot.slane %v2881_v17, 2  ;;  %v3257_v57 = vld [vmem:[%s3338_s19 + $0x18] sm:$0xff]  ;;  %v5307_v46 = vld [vmem:[#allocation39_spill] sm:$0xff] }
 0x14a   : > { %v1156_v52 = vpop.permute.xlu1 %1155  ;;  %v1877_v56 = vsel %vm1875_vm7, %v1844_v33, %v1154_v31  ;;  %v5305_v31 = vld [vmem:[#allocation33_spill] sm:$0xff]  ;;  %v1746_v33 = vsel %vm1743_vm3, %v3257_v57, %v5307_v46  ;;  %v2839_v46 = vld [vmem:[%s3338_s19 + $0xe8] sm:$0x3] }
 0x14b   : > { %v982_v45 = vpop.permute.xlu0 %981  ;;  %v1910_v4 = vsel %vm1908_vm8, %v1877_v56, %v1282_v44  ;;  %v1110_v44 = vsel %vm574_vm1, %v5306_v54, %v1109_v61  ;;  %v1601_v17 = vsel %vm574_vm1, %v1598_v62, %v1600_v55  ;;  %v1779_v56 = vsel %vm1776_vm4, %v1746_v33, %v4022_v50 }
 0x14c   : > { %1671 = vrot.lane.b32.xlu1 %v1599_v27, %s3293_s27  ;;  %v1943_v8 = vsel %vm1941_vm9, %v1910_v4, %v1474_v59  ;;  %v1812_v61 = vsel %vm1809_vm5, %v1779_v56, %v4275_v51  ;;  %v1427_v62 = vrot.slane %v2883_v25, 1 }
 0x14d   : > { %1497 = vrot.lane.b32.xlu0 %v1425_v60, %s3292_s26  ;;  %v2882_v60 = vld [vmem:[%s3338_s19 + $0xd8] sm:$0xff] }
 0x14e   : > { %v1158_v37 = vpop.permute.xlu1 %1157  ;;  %v1426_v20 = vrot.slane %v2882_v60, 1 }
 0x14f   : > { %v1650_v63 = vpop.permute.xlu0 %1649 }
 0x150   : > { %v1976_v53 = vsel %vm1974_vm10, %v1943_v8, %v1650_v63  ;;  %1179 = vrot.lane.b32.xlu1 %v5305_v31, %s3290_s5  ;;  %v2884_v8 = vld [vmem:[%s3338_s19 + $0xe8] sm:$0x3]  ;;  %v1602_v31 = vrot.slane %v2882_v60, 2 }
 0x151   : > { %1005 = vrot.lane.b32.xlu0 %v934_v26, %s3289_s23  ;;  %3101 = vmatmul.mubr.msk.f32.vlgmr.msra.gmra.mrb[0].mxu0 %vm2019_vm11, %v1976_v53  ;;  %v1845_v26 = vsel %vm1842_vm6, %v1812_v61, %v4386_v10 }
 0x152   : > { %3159 = vmatmul.mubr.msk.f32.vlgmr.msra.gmra.mrb[0].mxu1 %vm2019_vm11, %v1976_v53  ;;  %v1286_v27 = vpop.permute.xlu1 %1285  ;;  %v1878_v63 = vsel %vm1875_vm7, %v1845_v26, %v1156_v52  ;;  %v1603_v53 = vrot.slane %v2883_v25, 2  ;;  %v5308_v52 = vld [vmem:[#allocation16_spill] sm:$0xff]  ;;  %v938_v26 = vrot.slane %v2839_v46, 1 }
 0x153   : > { %v1284_v59 = vpop.permute.xlu0 %1283 }
 0x154   : > { %1181 = vrot.lane.b32.xlu1 %v1110_v44, %s3290_s5  ;;  %v1911_v50 = vsel %vm1908_vm8, %v1878_v63, %v1284_v59  ;;  %v1428_v44 = vsel %vm397_vm0, %v1426_v20, %v1427_v62  ;;  %v3258_v59 = vld [vmem:[%s3338_s19 + $0x20] sm:$0xff] }
 0x155   : > { %1673 = vrot.lane.b32.xlu0 %v1601_v17, %s3293_s27  ;;  %v1429_v17 = vrot.slane %v2884_v8, 1 }
 0x156   : > { %v4444_v4 = vpop.permute.xlu1 %983 }
 0x157   : > { %v1476_v55 = vpop.permute.xlu0 %1475  ;;  %v1430_v20 = vsel %vm397_vm0, %v1427_v62, %v1429_v17  ;;  %v5310_v62 = vld [vmem:[#allocation13_spill] sm:$0xff] }
 0x158   : > { %1309 = vrot.lane.b32.xlu1 %v2883_v25, %s3291_s18  ;;  %v1944_v51 = vsel %vm1941_vm9, %v1911_v50, %v1476_v55  ;;  %v5309_v25 = vld [vmem:[#allocation41_spill] sm:$0xff] }
 0x159   : > { %1307 = vrot.lane.b32.xlu0 %v2882_v60, %s3291_s18  ;;  %v1747_v33 = vsel %vm1743_vm3, %v3258_v59, %v5309_v25  ;;  %v1604_v60 = vsel %vm574_vm1, %v1602_v31, %v1603_v53  ;;  %v1114_v31 = vrot.slane %v2839_v46, 2  ;;  %v2886_v59 = vld [vmem:[%s3338_s19 + $0xf8] sm:$0xff]  ;;  %v2885_v25 = vld [vmem:[%s3338_s19 + $0xf0] sm:$0xff] }
 0x15a   : > { %v1652_v54 = vpop.permute.xlu1 %1651  ;;  %v1780_v56 = vsel %vm1776_vm4, %v1747_v33, %v4020_v12  ;;  %v3259_v33 = vld [vmem:[%s3338_s19 + $0x30] sm:$0xff] }
 0x15b   : > { %v1977_v10 = vsel %vm1974_vm10, %v1944_v51, %v1652_v54  ;;  %v1478_v57 = vpop.permute.xlu0 %1477  ;;  %v1813_v55 = vsel %vm1809_vm5, %v1780_v56, %v4272_v36  ;;  %v1605_v36 = vrot.slane %v2884_v8, 2 }
 0x15c   : > { %1007 = vrot.lane.b32.xlu1 %v5308_v52, %s3289_s23  ;;  %3103 = vmatprep.mubr.msk.f32.mxu0 %vm2019_vm11, %v1977_v10  ;;  %v1846_v50 = vsel %vm1842_vm6, %v1813_v55, %v982_v45 }
 0x15d   : > { %1499 = vrot.lane.b32.xlu0 %v1428_v44, %s3292_s26  ;;  %3161 = vmatprep.mubr.msk.f32.mxu1 %vm2019_vm11, %v1977_v10  ;;  %v1879_v51 = vsel %vm1875_vm7, %v1846_v50, %v1158_v37  ;;  %v939_v44 = vsel %vm397_vm0, %v5310_v62, %v938_v26  ;;  %v5311_v37 = vld [vmem:[#allocation35_spill] sm:$0xff]  ;;  %v1606_v8 = vsel %vm574_vm1, %v1603_v53, %v1605_v36  ;;  %v1432_v53 = vrot.slane %v2886_v59, 1  ;;  %v2887_v62 = vld [vmem:[%s3338_s19 + $0x100] sm:$0x3] }
 0x15e   : > { %v1160_v61 = vpop.permute.xlu1 %1159  ;;  %v1912_v12 = vsel %vm1908_vm8, %v1879_v51, %v1286_v27  ;;  %v5312_v27 = vld [vmem:[#allocation32_spill] sm:$0xff]  ;;  %v1431_v51 = vrot.slane %v2885_v25, 1 }
 0x15f   : > { %v986_v63 = vpop.permute.xlu0 %985  ;;  %v1945_v17 = vsel %vm1941_vm9, %v1912_v12, %v1478_v57  ;;  %v1115_v46 = vsel %vm574_vm1, %v5312_v27, %v1114_v31  ;;  %v1434_v27 = vrot.slane %v2887_v62, 1 }
 0x160   : > { %1675 = vrot.lane.b32.xlu1 %v1604_v60, %s3293_s27  ;;  %v5313_v60 = vld [vmem:[#allocation44_spill] sm:$0xff] }
 0x161   : > { %1501 = vrot.lane.b32.xlu0 %v1430_v20, %s3292_s26  ;;  %v1748_v56 = vsel %vm1743_vm3, %v3259_v33, %v5313_v60  ;;  %v5314_v20 = vld [vmem:[#allocation51_spill] sm:$0xff]  ;;  %v5317_v60 = vld [vmem:[#allocation50_spill] sm:$0xff] }
 0x162   : > { %v1162_v54 = vpop.permute.xlu1 %1161  ;;  %v1781_v26 = vsel %vm1776_vm4, %v1748_v56, %v5314_v20 }
 0x163   : > { %v1654_v45 = vpop.permute.xlu0 %1653  ;;  %v1814_v55 = vsel %vm1809_vm5, %v1781_v26, %v4283_v58  ;;  %v1435_v26 = vsel %vm397_vm0, %v1432_v53, %v1434_v27 }
 0x164   : > { %v1978_v10 = vsel %vm1974_vm10, %v1945_v17, %v1654_v45  ;;  %1183 = vrot.lane.b32.xlu1 %v5311_v37, %s3290_s5  ;;  %v1847_v31 = vsel %vm1842_vm6, %v1814_v55, %v4444_v4  ;;  %v1608_v17 = vrot.slane %v2886_v59, 2  ;;  %v1607_v45 = vrot.slane %v2885_v25, 2 }
 0x165   : > { %1009 = vrot.lane.b32.xlu0 %v939_v44, %s3289_s23  ;;  %3104 = vmatmul.mubr.msk.f32.gmra.mrb[2].mxu0 %vm2019_vm11, %v1978_v10  ;;  %v1880_v44 = vsel %vm1875_vm7, %v1847_v31, %v1160_v61  ;;  %v1433_v37 = vsel %vm397_vm0, %v1431_v51, %v1432_v53  ;;  %v5315_v61 = vld [vmem:[#allocation18_spill] sm:$0xff]  ;;  %v5318_v53 = vld [vmem:[#allocation15_spill] sm:$0xff] }
 0x166   : > { %3162 = vmatmul.mubr.msk.f32.gmra.mrb[2].mxu1 %vm2019_vm11, %v1978_v10  ;;  %v1290_v52 = vpop.permute.xlu1 %1289 }
 0x167   : > { %v1288_v57 = vpop.permute.xlu0 %1287 }
 0x168   : > { %1185 = vrot.lane.b32.xlu1 %v1115_v46, %s3290_s5  ;;  %v1913_v36 = vsel %vm1908_vm8, %v1880_v44, %v1288_v57  ;;  %v3260_v57 = vld [vmem:[%s3338_s19 + $0x38] sm:$0xff] }
 0x169   : > { %1677 = vrot.lane.b32.xlu0 %v1606_v8, %s3293_s27  ;;  %v2842_v8 = vld [vmem:[%s3338_s19 + $0x100] sm:$0x3] }
 0x16a   : > { %v4499_v50 = vpop.permute.xlu1 %987  ;;  %v943_v55 = vrot.slane %v2842_v8, 1 }
 0x16b   : > { %v1480_v12 = vpop.permute.xlu0 %1479 }
 0x16c   : > { %1313 = vrot.lane.b32.xlu1 %v2886_v59, %s3291_s18  ;;  %v1946_v58 = vsel %vm1941_vm9, %v1913_v36, %v1480_v12  ;;  %v5316_v59 = vld [vmem:[#allocation43_spill] sm:$0xff]  ;;  %v1119_v36 = vrot.slane %v2842_v8, 2 }
 0x16d   : > { %1311 = vrot.lane.b32.xlu0 %v2885_v25, %s3291_s18  ;;  %v1749_v33 = vsel %vm1743_vm3, %v3260_v57, %v5316_v59  ;;  %v1609_v25 = vsel %vm574_vm1, %v1607_v45, %v1608_v17  ;;  %v2888_v57 = vld [vmem:[%s3338_s19 + $0x108] sm:$0xff] }
 0x16e   : > { %v1656_v10 = vpop.permute.xlu1 %1655  ;;  %v1782_v56 = vsel %vm1776_vm4, %v1749_v33, %v5317_v60  ;;  %v3261_v59 = vld [vmem:[%s3338_s19 + $0x48] sm:$0xff]  ;;  %v5321_v33 = vld [vmem:[#allocation45_spill] sm:$0xff] }
 0x16f   : > { %v1979_v4 = vsel %vm1974_vm10, %v1946_v58, %v1656_v10  ;;  %v1482_v46 = vpop.permute.xlu0 %1481  ;;  %v1815_v51 = vsel %vm1809_vm5, %v1782_v56, %v4279_v3  ;;  %v944_v10 = vsel %vm397_vm0, %v5318_v53, %v943_v55  ;;  %v1610_v3 = vrot.slane %v2887_v62, 2 }
 0x170   : > { %1011 = vrot.lane.b32.xlu1 %v5315_v61, %s3289_s23  ;;  %3106 = vmatprep.mubr.msk.f32.mxu0 %vm2019_vm11, %v1979_v4  ;;  %v1848_v12 = vsel %vm1842_vm6, %v1815_v51, %v986_v63  ;;  %v2889_v61 = vld [vmem:[%s3338_s19 + $0x110] sm:$0xff]  ;;  %v1612_v53 = vrot.slane %v2888_v57, 2 }
 0x171   : > { %1503 = vrot.lane.b32.xlu0 %v1433_v37, %s3292_s26  ;;  %3164 = vmatprep.mubr.msk.f32.mxu1 %vm2019_vm11, %v1979_v4  ;;  %v1881_v44 = vsel %vm1875_vm7, %v1848_v12, %v1162_v54  ;;  %v5319_v54 = vld [vmem:[#allocation37_spill] sm:$0xff]  ;;  %v1611_v62 = vsel %vm574_vm1, %v1608_v17, %v1610_v3  ;;  %v1437_v55 = vrot.slane %v2889_v61, 1  ;;  %v1436_v17 = vrot.slane %v2888_v57, 1 }
 0x172   : > { %v1164_v20 = vpop.permute.xlu1 %1163  ;;  %v1914_v45 = vsel %vm1908_vm8, %v1881_v44, %v1290_v52  ;;  %v5320_v52 = vld [vmem:[#allocation34_spill] sm:$0xff]  ;;  %v2890_v44 = vld [vmem:[%s3338_s19 + $0x118] sm:$0x3] }
 0x173   : > { %v990_v31 = vpop.permute.xlu0 %989  ;;  %v1947_v37 = vsel %vm1941_vm9, %v1914_v45, %v1482_v46  ;;  %v1120_v4 = vsel %vm574_vm1, %v5320_v52, %v1119_v36  ;;  %v1613_v45 = vrot.slane %v2889_v61, 2  ;;  %v1438_v3 = vsel %vm397_vm0, %v1436_v17, %v1437_v55 }
 0x174   : > { %1679 = vrot.lane.b32.xlu1 %v1609_v25, %s3293_s27  ;;  %v1750_v25 = vsel %vm1743_vm3, %v3261_v59, %v5321_v33  ;;  %v1615_v17 = vrot.slane %v2890_v44, 2 }
 0x175   : > { %1505 = vrot.lane.b32.xlu0 %v1435_v26, %s3292_s26  ;;  %v1783_v60 = vsel %vm1776_vm4, %v1750_v25, %v4050_v42 }
 0x176   : > { %v1166_v58 = vpop.permute.xlu1 %1165  ;;  %v1816_v56 = vsel %vm1809_vm5, %v1783_v60, %v4293_v18 }
 0x177   : > { %v1658_v63 = vpop.permute.xlu0 %1657  ;;  %v1849_v51 = vsel %vm1842_vm6, %v1816_v56, %v4499_v50  ;;  %v5323_v56 = vld [vmem:[#allocation17_spill] sm:$0xff] }
 0x178   : > { %v1980_v27 = vsel %vm1974_vm10, %v1947_v37, %v1658_v63  ;;  %1187 = vrot.lane.b32.xlu1 %v5319_v54, %s3290_s5  ;;  %v1882_v36 = vsel %vm1875_vm7, %v1849_v51, %v1164_v20  ;;  %v1439_v37 = vrot.slane %v2890_v44, 1  ;;  %v5322_v20 = vld [vmem:[#allocation19_spill] sm:$0xff]  ;;  %v1614_v54 = vsel %vm574_vm1, %v1612_v53, %v1613_v45  ;;  %v5324_v51 = vld [vmem:[#allocation38_spill] sm:$0xff] }
 0x179   : > { %1013 = vrot.lane.b32.xlu0 %v944_v10, %s3289_s23  ;;  %3107 = vmatmul.mubr.msk.f32.gmra.mrb[4].mxu0 %vm2019_vm11, %v1980_v27  ;;  %v1616_v44 = vsel %vm574_vm1, %v1613_v45, %v1615_v17 }
 0x17a   : > { %3165 = vmatmul.mubr.msk.f32.gmra.mrb[4].mxu1 %vm2019_vm11, %v1980_v27  ;;  %v1294_v8 = vpop.permute.xlu1 %1293  ;;  %v2845_v27 = vld [vmem:[%s3338_s19 + $0x118] sm:$0x3] }
 0x17b   : > { %v1292_v46 = vpop.permute.xlu0 %1291  ;;  %v1124_v33 = vrot.slane %v2845_v27, 2 }
 0x17c   : > { %1189 = vrot.lane.b32.xlu1 %v1120_v4, %s3290_s5  ;;  %v1915_v42 = vsel %vm1908_vm8, %v1882_v36, %v1292_v46  ;;  %v1440_v4 = vsel %vm397_vm0, %v1437_v55, %v1439_v37  ;;  %v1817_v46 = vsel %vm1809_vm5, %v4048_v15, %v4290_v13  ;;  %v2846_v36 = vld [vmem:[%s3338_s19 + $0x120] sm:$0xff] }
 0x17d   : > { %1681 = vrot.lane.b32.xlu0 %v1611_v62, %s3293_s27  ;;  %v948_v62 = vrot.slane %v2845_v27, 1 }
 0x17e   : > { %v992_v26 = vpop.permute.xlu1 %991 }
 0x17f   : > { %v1484_v12 = vpop.permute.xlu0 %1483  ;;  %v949_v55 = vsel %vm397_vm0, %v5323_v56, %v948_v62  ;;  %v2893_v62 = vld [vmem:[%s3338_s19 + $0x130] sm:$0x3] }
 0x180   : > { %1317 = vrot.lane.b32.xlu1 %v2889_v61, %s3291_s18  ;;  %v1948_v18 = vsel %vm1941_vm9, %v1915_v42, %v1484_v12  ;;  %v2892_v42 = vld [vmem:[%s3338_s19 + $0x128] sm:$0xff] }
 0x181   : > { %1315 = vrot.lane.b32.xlu0 %v2888_v57, %s3291_s18  ;;  %v1850_v57 = vsel %vm1842_vm6, %v1817_v46, %v990_v31 }
 0x182   : > { %v1660_v10 = vpop.permute.xlu1 %1659  ;;  %v1883_v59 = vsel %vm1875_vm7, %v1850_v57, %v1166_v58  ;;  %v5325_v58 = vld [vmem:[#allocation36_spill] sm:$0xff]  ;;  %v1444_v57 = vrot.slane %v2893_v62, 1 }
 0x183   : > { %v1981_v50 = vsel %vm1974_vm10, %v1948_v18, %v1660_v10  ;;  %v1486_v63 = vpop.permute.xlu0 %1485  ;;  %v1916_v25 = vsel %vm1908_vm8, %v1883_v59, %v1294_v8  ;;  %v1125_v8 = vsel %vm574_vm1, %v5325_v58, %v1124_v33  ;;  %v950_v18 = vrot.slane %v2846_v36, 1 }
 0x184   : > { %1015 = vrot.lane.b32.xlu1 %v5322_v20, %s3289_s23  ;;  %3109 = vmatprep.mubr.msk.f32.mxu0 %vm2019_vm11, %v1981_v50  ;;  %v1949_v15 = vsel %vm1941_vm9, %v1916_v25, %v1486_v63  ;;  %v1442_v10 = vrot.slane %v2892_v42, 1  ;;  %v1819_v59 = vsel %vm1809_vm5, %v4066_v14, %v4299_v41  ;;  %v2848_v25 = vld [vmem:[%s3338_s19 + $0x130] sm:$0x3] }
 0x185   : > { %1507 = vrot.lane.b32.xlu0 %v1438_v3, %s3292_s26  ;;  %3167 = vmatprep.mubr.msk.f32.mxu1 %vm2019_vm11, %v1981_v50  ;;  %v1818_v3 = vsel %vm1809_vm5, %v4069_v16, %v4301_v48 }
 0x186   : > { %v1168_v52 = vpop.permute.xlu1 %1167  ;;  %v1851_v50 = vsel %vm1842_vm6, %v1818_v3, %v992_v26  ;;  %v1443_v20 = vsel %vm397_vm0, %v950_v18, %v1442_v10  ;;  %v1126_v26 = vrot.slane %v2846_v36, 2  ;;  %v2849_v3 = vld [vmem:[%s3338_s19 + $0x138] sm:$0xff] }
 0x187   : > { %v994_v61 = vpop.permute.xlu0 %993  ;;  %v1884_v45 = vsel %vm1875_vm7, %v1851_v50, %v1168_v52  ;;  %v1618_v52 = vrot.slane %v2892_v42, 2  ;;  %v2895_v50 = vld [vmem:[%s3338_s19 + $0x140] sm:$0xff] }
 0x188   : > { %1683 = vrot.lane.b32.xlu1 %v1614_v54, %s3293_s27  ;;  %v1852_v56 = vsel %vm1842_vm6, %v1819_v59, %v994_v61  ;;  %v1129_v61 = vrot.slane %v2848_v25, 2  ;;  %v1131_v59 = vrot.slane %v2849_v3, 2 }
 0x189   : > { %1509 = vrot.lane.b32.xlu0 %v1440_v4, %s3292_s26  ;;  %v1619_v17 = vsel %vm574_vm1, %v1126_v26, %v1618_v52 }
 0x18a   : > { %v1170_v60 = vpop.permute.xlu1 %1169 }
 0x18b   : > { %v1662_v13 = vpop.permute.xlu0 %1661 }
 0x18c   : > { %v1982_v31 = vsel %vm1974_vm10, %v1949_v15, %v1662_v13  ;;  %1191 = vrot.lane.b32.xlu1 %v5324_v51, %s3290_s5  ;;  %v953_v51 = vrot.slane %v2848_v25, 1  ;;  %v1623_v25 = vrot.slane %v2895_v50, 2 }
 0x18d   : > { %1017 = vrot.lane.b32.xlu0 %v949_v55, %s3289_s23  ;;  %3110 = vmatmul.mubr.msk.f32.gmra.mrb[6].mxu0 %vm2019_vm11, %v1982_v31  ;;  %v1885_v55 = vsel %vm1875_vm7, %v1852_v56, %v1170_v60 }
 0x18e   : > { %3168 = vmatmul.mubr.msk.f32.gmra.mrb[6].mxu1 %vm2019_vm11, %v1982_v31  ;;  %v1298_v12 = vpop.permute.xlu1 %1297  ;;  %v1445_v31 = vsel %vm397_vm0, %v1442_v10, %v1444_v57 }
 0x18f   : > { %v1296_v53 = vpop.permute.xlu0 %1295  ;;  %v1918_v15 = vsel %vm1908_vm8, %v1885_v55, %v1298_v12  ;;  %v1620_v12 = vrot.slane %v2893_v62, 2  ;;  %v1821_v62 = vsel %vm1809_vm5, %v4080_v28, %v4306_v1  ;;  %v2851_v28 = vld [vmem:[%s3338_s19 + $0x148] sm:$0x3] }
 0x190   : > { %1193 = vrot.lane.b32.xlu1 %v1125_v8, %s3290_s5  ;;  %v1917_v27 = vsel %vm1908_vm8, %v1884_v45, %v1296_v53  ;;  %v954_v8 = vsel %vm397_vm0, %v1442_v10, %v953_v51 }
 0x191   : > { %1685 = vrot.lane.b32.xlu0 %v1616_v44, %s3293_s27  ;;  %v1621_v18 = vsel %vm574_vm1, %v1618_v52, %v1620_v12 }
 0x192   : > { %v996_v37 = vpop.permute.xlu1 %995 }
 0x193   : > { %v1488_v63 = vpop.permute.xlu0 %1487 }
 0x194   : > { %827 = vrot.lane.b32.xlu1 %v2846_v36, %s3288_s22  ;;  %v1950_v54 = vsel %vm1941_vm9, %v1917_v27, %v1488_v63 }
 0x195   : > { %1319 = vrot.lane.b32.xlu0 %v2846_v36, %s3291_s18  ;;  %v1130_v36 = vsel %vm574_vm1, %v1618_v52, %v1129_v61  ;;  %v2896_v52 = vld [vmem:[%s3338_s19 + $0x148] sm:$0x3]  ;;  %v1822_v61 = vsel %vm1809_vm5, %v4101_v22, %v4319_v21 }
 0x196   : > { %v1664_v4 = vpop.permute.xlu1 %1663  ;;  %v1625_v12 = vrot.slane %v2896_v52, 2 }
 0x197   : > { %v1983_v16 = vsel %vm1974_vm10, %v1950_v54, %v1664_v4  ;;  %v1490_v48 = vpop.permute.xlu0 %1489  ;;  %v1447_v54 = vrot.slane %v2895_v50, 1 }
 0x198   : > { %1511 = vrot.lane.b32.xlu1 %v1443_v20, %s3292_s26  ;;  %3112 = vmatprep.mubr.msk.f32.mxu0 %vm2019_vm11, %v1983_v16  ;;  %v1951_v14 = vsel %vm1941_vm9, %v1918_v15, %v1490_v48  ;;  %v1626_v21 = vsel %vm574_vm1, %v1623_v25, %v1625_v12 }
 0x199   : > { %1321 = vrot.lane.b32.xlu0 %v2892_v42, %s3291_s18  ;;  %3170 = vmatprep.mubr.msk.f32.mxu1 %vm2019_vm11, %v1983_v16 }
 0x19a   : > { %v1172_v46 = vpop.permute.xlu1 %1171 }
 0x19b   : > { %v998_v33 = vpop.permute.xlu0 %997 }
 0x19c   : > { %1019 = vrot.lane.b32.xlu1 %v1443_v20, %s3289_s23  ;;  %v955_v20 = vrot.slane %v2849_v3, 1 }
 0x19d   : > { %829 = vrot.lane.b32.xlu0 %v2892_v42, %s3288_s22  ;;  %v1820_v42 = vsel %vm1809_vm5, %v4084_v39, %v4309_v9 }
 0x19e   : > { %v1174_v13 = vpop.permute.xlu1 %1173  ;;  %v1853_v63 = vsel %vm1842_vm6, %v1820_v42, %v996_v37  ;;  %v1448_v37 = vsel %vm397_vm0, %v955_v20, %v1447_v54 }
 0x19f   : > { %v1666_v41 = vpop.permute.xlu0 %1665  ;;  %v1886_v45 = vsel %vm1875_vm7, %v1853_v63, %v1172_v46  ;;  %v1854_v46 = vsel %vm1842_vm6, %v1821_v62, %v998_v33  ;;  %v1624_v33 = vsel %vm574_vm1, %v1131_v59, %v1623_v25  ;;  %v2852_v63 = vld [vmem:[%s3338_s19 + $0x150] sm:$0xff] }
 0x1a0   : > { %v1984_v58 = vsel %vm1974_vm10, %v1951_v14, %v1666_v41  ;;  %1687 = vrot.lane.b32.xlu1 %v1619_v17, %s3293_s27  ;;  %v1887_v57 = vsel %vm1875_vm7, %v1854_v46, %v1174_v13  ;;  %v958_v14 = vrot.slane %v2851_v28, 1 }
 0x1a1   : > { %1513 = vrot.lane.b32.xlu0 %v1445_v31, %s3292_s26  ;;  %3113 = vmatmul.mubr.msk.f32.gmra.mrb[8].mxu0 %vm2019_vm11, %v1984_v58 }
 0x1a2   : > { %3171 = vmatmul.mubr.msk.f32.gmra.mrb[8].mxu1 %vm2019_vm11, %v1984_v58  ;;  %v1302_v60 = vpop.permute.xlu1 %1301  ;;  %v1134_v58 = vrot.slane %v2851_v28, 2 }
 0x1a3   : > { %v1300_v44 = vpop.permute.xlu0 %1299  ;;  %v1920_v56 = vsel %vm1908_vm8, %v1887_v57, %v1302_v60  ;;  %v2899_v57 = vld [vmem:[%s3338_s19 + $0x160] sm:$0x3] }
 0x1a4   : > { %1195 = vrot.lane.b32.xlu1 %v1619_v17, %s3290_s5  ;;  %v1919_v27 = vsel %vm1908_vm8, %v1886_v45, %v1300_v44  ;;  %v1449_v17 = vrot.slane %v2896_v52, 1 }
 0x1a5   : > { %1021 = vrot.lane.b32.xlu0 %v954_v8, %s3289_s23  ;;  %v959_v8 = vsel %vm397_vm0, %v1447_v54, %v958_v14 }
 0x1a6   : > { %v1000_v53 = vpop.permute.xlu1 %999  ;;  %v1450_v51 = vsel %vm397_vm0, %v1447_v54, %v1449_v17 }
 0x1a7   : > { %v1492_v10 = vpop.permute.xlu0 %1491  ;;  %v1855_v44 = vsel %vm1842_vm6, %v1822_v61, %v1000_v53  ;;  %v1630_v61 = vrot.slane %v2899_v57, 2 }
 0x1a8   : > { %1197 = vrot.lane.b32.xlu1 %v1130_v36, %s3290_s5  ;;  %v1952_v39 = vsel %vm1941_vm9, %v1919_v27, %v1492_v10  ;;  %v2898_v10 = vld [vmem:[%s3338_s19 + $0x158] sm:$0xff]  ;;  %v960_v27 = vrot.slane %v2852_v63, 1 }
 0x1a9   : > { %1689 = vrot.lane.b32.xlu0 %v1621_v18, %s3293_s27  ;;  %v1452_v20 = vrot.slane %v2898_v10, 1 }
 0x1aa   : > { %v1668_v9 = vpop.permute.xlu1 %1667 }
 0x1ab   : > { %v1985_v4 = vsel %vm1974_vm10, %v1952_v39, %v1668_v9  ;;  %v1494_v16 = vpop.permute.xlu0 %1493  ;;  %v1823_v39 = vsel %vm1809_vm5, %v4097_v34, %v4316_v6  ;;  %v1136_v6 = vrot.slane %v2852_v63, 2 }
 0x1ac   : > { %831 = vrot.lane.b32.xlu1 %v2849_v3, %s3288_s22  ;;  %3115 = vmatprep.mubr.msk.f32.mxu0 %vm2019_vm11, %v1985_v4  ;;  %v1953_v15 = vsel %vm1941_vm9, %v1920_v56, %v1494_v16 }
 0x1ad   : > { %1323 = vrot.lane.b32.xlu0 %v2849_v3, %s3291_s18  ;;  %3173 = vmatprep.mubr.msk.f32.mxu1 %vm2019_vm11, %v1985_v4  ;;  %v1135_v3 = vsel %vm574_vm1, %v1623_v25, %v1134_v58  ;;  %v1454_v25 = vrot.slane %v2899_v57, 1  ;;  %v2857_v57 = vld [vmem:[%s3338_s19 + $0x178] sm:$0x3] }
 0x1ae   : > { %v1176_v48 = vpop.permute.xlu1 %1175 }
 0x1af   : > { %v1002_v26 = vpop.permute.xlu0 %1001  ;;  %v1888_v42 = vsel %vm1875_vm7, %v1855_v44, %v1176_v48  ;;  %v1455_v28 = vsel %vm397_vm0, %v1452_v20, %v1454_v25 }
 0x1b0   : > { %1515 = vrot.lane.b32.xlu1 %v1448_v37, %s3292_s26  ;;  %v1856_v4 = vsel %vm1842_vm6, %v1823_v39, %v1002_v26  ;;  %v1628_v26 = vrot.slane %v2898_v10, 2 }
 0x1b1   : > { %1325 = vrot.lane.b32.xlu0 %v2895_v50, %s3291_s18 }
 0x1b2   : > { %v1178_v55 = vpop.permute.xlu1 %1177  ;;  %v1629_v17 = vsel %vm574_vm1, %v1136_v6, %v1628_v26 }
 0x1b3   : > { %v1670_v31 = vpop.permute.xlu0 %1669  ;;  %v1889_v16 = vsel %vm1875_vm7, %v1856_v4, %v1178_v55  ;;  %v2854_v55 = vld [vmem:[%s3338_s19 + $0x160] sm:$0x3] }
 0x1b4   : > { %v1986_v1 = vsel %vm1974_vm10, %v1953_v15, %v1670_v31  ;;  %1023 = vrot.lane.b32.xlu1 %v1448_v37, %s3289_s23  ;;  %v1453_v37 = vsel %vm397_vm0, %v960_v27, %v1452_v20  ;;  %v1824_v15 = vsel %vm1809_vm5, %v4119_v29, %v4327_v2 }
 0x1b5   : > { %833 = vrot.lane.b32.xlu0 %v2895_v50, %s3288_s22  ;;  %3116 = vmatmul.mubr.msk.f32.gmra.mrb[10].mxu0 %vm2019_vm11, %v1986_v1 }
 0x1b6   : > { %3174 = vmatmul.mubr.msk.f32.gmra.mrb[10].mxu1 %vm2019_vm11, %v1986_v1  ;;  %v1306_v13 = vpop.permute.xlu1 %1305  ;;  %v963_v1 = vrot.slane %v2854_v55, 1 }
 0x1b7   : > { %v1304_v41 = vpop.permute.xlu0 %1303  ;;  %v1922_v48 = vsel %vm1908_vm8, %v1889_v16, %v1306_v13 }
 0x1b8   : > { %1691 = vrot.lane.b32.xlu1 %v1624_v33, %s3293_s27  ;;  %v1921_v18 = vsel %vm1908_vm8, %v1888_v42, %v1304_v41  ;;  %v1139_v41 = vrot.slane %v2854_v55, 2  ;;  %v964_v58 = vsel %vm397_vm0, %v1452_v20, %v963_v1  ;;  %v2855_v42 = vld [vmem:[%s3338_s19 + $0x168] sm:$0xff]  ;;  %v1827_v1 = vsel %vm1809_vm5, %v4133_v38, %v4334_v0 }
 0x1b9   : > { %1517 = vrot.lane.b32.xlu0 %v1450_v51, %s3292_s26  ;;  %v1141_v4 = vrot.slane %v2855_v42, 2 }
 0x1ba   : > { %v1004_v60 = vpop.permute.xlu1 %1003  ;;  %v1140_v12 = vsel %vm574_vm1, %v1628_v26, %v1139_v41 }
 0x1bb   : > { %v1496_v36 = vpop.permute.xlu0 %1495 }
 0x1bc   : > { %1199 = vrot.lane.b32.xlu1 %v1624_v33, %s3290_s5  ;;  %v1954_v50 = vsel %vm1941_vm9, %v1921_v18, %v1496_v36  ;;  %v1857_v33 = vsel %vm1842_vm6, %v1824_v15, %v1004_v60  ;;  %v1631_v36 = vsel %vm574_vm1, %v1628_v26, %v1630_v61  ;;  %v2901_v18 = vld [vmem:[%s3338_s19 + $0x170] sm:$0xff]  ;;  %v2904_v61 = vld [vmem:[%s3338_s19 + $0x188] sm:$0xff] }
 0x1bd   : > { %1025 = vrot.lane.b32.xlu0 %v959_v8, %s3289_s23  ;;  %v1633_v16 = vrot.slane %v2901_v18, 2 }
 0x1be   : > { %v1672_v22 = vpop.permute.xlu1 %1671 }
 0x1bf   : > { %v1987_v53 = vsel %vm1974_vm10, %v1954_v50, %v1672_v22  ;;  %v1498_v45 = vpop.permute.xlu0 %1497  ;;  %v1634_v26 = vsel %vm574_vm1, %v1141_v4, %v1633_v16 }
 0x1c0   : > { %1201 = vrot.lane.b32.xlu1 %v1135_v3, %s3290_s5  ;;  %3118 = vmatprep.mubr.msk.f32.mxu0 %vm2019_vm11, %v1987_v53  ;;  %v1955_v52 = vsel %vm1941_vm9, %v1922_v48, %v1498_v45  ;;  %v1825_v3 = vsel %vm1809_vm5, %v4116_v49, %v4323_v43 }
 0x1c1   : > { %1693 = vrot.lane.b32.xlu0 %v1626_v21, %s3293_s27  ;;  %3176 = vmatprep.mubr.msk.f32.mxu1 %vm2019_vm11, %v1987_v53 }
 0x1c2   : > { %v1180_v54 = vpop.permute.xlu1 %1179 }
 0x1c3   : > { %v1006_v9 = vpop.permute.xlu0 %1005  ;;  %v1890_v51 = vsel %vm1875_vm7, %v1857_v33, %v1180_v54 }
 0x1c4   : > { %835 = vrot.lane.b32.xlu1 %v2852_v63, %s3288_s22  ;;  %v1858_v22 = vsel %vm1842_vm6, %v1825_v3, %v1006_v9  ;;  %v2902_v9 = vld [vmem:[%s3338_s19 + $0x178] sm:$0x3] }
 0x1c5   : > { %1327 = vrot.lane.b32.xlu0 %v2852_v63, %s3291_s18  ;;  %v965_v63 = vrot.slane %v2855_v42, 1 }
 0x1c6   : > { %v1182_v62 = vpop.permute.xlu1 %1181 }
 0x1c7   : > { %v1674_v46 = vpop.permute.xlu0 %1673  ;;  %v1891_v21 = vsel %vm1875_vm7, %v1858_v22, %v1182_v62  ;;  %v1459_v62 = vrot.slane %v2902_v9, 1 }
 0x1c8   : > { %v1988_v34 = vsel %vm1974_vm10, %v1955_v52, %v1674_v46  ;;  %1519 = vrot.lane.b32.xlu1 %v1453_v37, %s3292_s26 }
 0x1c9   : > { %1329 = vrot.lane.b32.xlu0 %v2898_v10, %s3291_s18  ;;  %3119 = vmatmul.mubr.msk.f32.gmra.mrb[12].mxu0 %vm2019_vm11, %v1988_v34 }
 0x1ca   : > { %3177 = vmatmul.mubr.msk.f32.gmra.mrb[12].mxu1 %vm2019_vm11, %v1988_v34  ;;  %v1310_v59 = vpop.permute.xlu1 %1309 }
 0x1cb   : > { %v1308_v56 = vpop.permute.xlu0 %1307  ;;  %v1924_v53 = vsel %vm1908_vm8, %v1891_v21, %v1310_v59  ;;  %v2905_v21 = vld [vmem:[%s3338_s19 + $0x190] sm:$0x3] }
 0x1cc   : > { %1027 = vrot.lane.b32.xlu1 %v1453_v37, %s3289_s23  ;;  %v1923_v14 = vsel %vm1908_vm8, %v1890_v51, %v1308_v56  ;;  %v1826_v37 = vsel %vm1809_vm5, %v4136_v40, %v4337_v19  ;;  %v968_v19 = vrot.slane %v2857_v57, 1 }
 0x1cd   : > { %837 = vrot.lane.b32.xlu0 %v2898_v10, %s3288_s22  ;;  %v1457_v10 = vrot.slane %v2901_v18, 1 }
 0x1ce   : > { %v1008_v31 = vpop.permute.xlu1 %1007 }
 0x1cf   : > { %v1500_v13 = vpop.permute.xlu0 %1499  ;;  %v1458_v43 = vsel %vm397_vm0, %v965_v63, %v1457_v10  ;;  %v1859_v52 = vsel %vm1842_vm6, %v1826_v37, %v1008_v31  ;;  %v1460_v40 = vsel %vm397_vm0, %v1457_v10, %v1459_v62  ;;  %v969_v31 = vsel %vm397_vm0, %v1457_v10, %v968_v19  ;;  %v2907_v19 = vld [vmem:[%s3338_s19 + $0x1a0] sm:$0xff] }
 0x1d0   : > { %1695 = vrot.lane.b32.xlu1 %v1629_v17, %s3293_s27  ;;  %v1956_v29 = vsel %vm1941_vm9, %v1923_v14, %v1500_v13 }
 0x1d1   : > { %1521 = vrot.lane.b32.xlu0 %v1455_v28, %s3292_s26  ;;  %v1635_v28 = vrot.slane %v2902_v9, 2 }
 0x1d2   : > { %v1676_v2 = vpop.permute.xlu1 %1675 }
 0x1d3   : > { %v1989_v60 = vsel %vm1974_vm10, %v1956_v29, %v1676_v2  ;;  %v1502_v8 = vpop.permute.xlu0 %1501  ;;  %v1636_v2 = vsel %vm574_vm1, %v1633_v16, %v1635_v28 }
 0x1d4   : > { %1203 = vrot.lane.b32.xlu1 %v1629_v17, %s3290_s5  ;;  %3121 = vmatprep.mubr.msk.f32.mxu0 %vm2019_vm11, %v1989_v60  ;;  %v1957_v27 = vsel %vm1941_vm9, %v1924_v53, %v1502_v8  ;;  %v1144_v17 = vrot.slane %v2857_v57, 2 }
 0x1d5   : > { %1029 = vrot.lane.b32.xlu0 %v964_v58, %s3289_s23  ;;  %3179 = vmatprep.mubr.msk.f32.mxu1 %vm2019_vm11, %v1989_v60  ;;  %v2858_v58 = vld [vmem:[%s3338_s19 + $0x180] sm:$0xff] }
 0x1d6   : > { %v1184_v44 = vpop.permute.xlu1 %1183  ;;  %v1145_v14 = vsel %vm574_vm1, %v1633_v16, %v1144_v17  ;;  %v970_v8 = vrot.slane %v2858_v58, 1  ;;  %v1146_v53 = vrot.slane %v2858_v58, 2  ;;  %v1829_v16 = vsel %vm1809_vm5, %v4152_v23, %v4343_v32  ;;  %v2906_v17 = vld [vmem:[%s3338_s19 + $0x198] sm:$0xff] }
 0x1d7   : > { %v1010_v50 = vpop.permute.xlu0 %1009  ;;  %v1892_v34 = vsel %vm1875_vm7, %v1859_v52, %v1184_v44 }
 0x1d8   : > { %1205 = vrot.lane.b32.xlu1 %v1140_v12, %s3290_s5  ;;  %v1860_v13 = vsel %vm1842_vm6, %v1827_v1, %v1010_v50  ;;  %v1462_v12 = vrot.slane %v2904_v61, 1  ;;  %v1466_v1 = vrot.slane %v2906_v17, 1 }
 0x1d9   : > { %1697 = vrot.lane.b32.xlu0 %v1631_v36, %s3293_s27 }
 0x1da   : > { %v1186_v45 = vpop.permute.xlu1 %1185 }
 0x1db   : > { %v1678_v20 = vpop.permute.xlu0 %1677  ;;  %v1893_v51 = vsel %vm1875_vm7, %v1860_v13, %v1186_v45  ;;  %v1638_v45 = vrot.slane %v2904_v61, 2  ;;  %v1643_v13 = vrot.slane %v2907_v19, 2 }
 0x1dc   : > { %v1990_v49 = vsel %vm1974_vm10, %v1957_v27, %v1678_v20  ;;  %839 = vrot.lane.b32.xlu1 %v2855_v42, %s3288_s22 }
 0x1dd   : > { %1331 = vrot.lane.b32.xlu0 %v2855_v42, %s3291_s18  ;;  %3122 = vmatmul.mubr.msk.f32.gmra.mrb[14].mxu0 %vm2019_vm11, %v1990_v49  ;;  %v1463_v42 = vsel %vm397_vm0, %v970_v8, %v1462_v12 }
 0x1de   : > { %3180 = vmatmul.mubr.msk.f32.gmra.mrb[14].mxu1 %vm2019_vm11, %v1990_v49  ;;  %v1314_v54 = vpop.permute.xlu1 %1313 }
 0x1df   : > { %v1312_v39 = vpop.permute.xlu0 %1311  ;;  %v1926_v41 = vsel %vm1908_vm8, %v1893_v51, %v1314_v54  ;;  %v1639_v54 = vsel %vm574_vm1, %v1146_v53, %v1638_v45 }
 0x1e0   : > { %1523 = vrot.lane.b32.xlu1 %v1458_v43, %s3292_s26  ;;  %v1925_v6 = vsel %vm1908_vm8, %v1892_v34, %v1312_v39 }
 0x1e1   : > { %1333 = vrot.lane.b32.xlu0 %v2901_v18, %s3291_s18 }
 0x1e2   : > { %v1012_v48 = vpop.permute.xlu1 %1011 }
 0x1e3   : > { %v1504_v46 = vpop.permute.xlu0 %1503 }
 0x1e4   : > { %1031 = vrot.lane.b32.xlu1 %v1458_v43, %s3289_s23  ;;  %v1958_v59 = vsel %vm1941_vm9, %v1925_v6, %v1504_v46  ;;  %v2860_v43 = vld [vmem:[%s3338_s19 + $0x190] sm:$0x3]  ;;  %v1640_v6 = vrot.slane %v2905_v21, 2 }
 0x1e5   : > { %841 = vrot.lane.b32.xlu0 %v2901_v18, %s3288_s22  ;;  %v1828_v18 = vsel %vm1809_vm5, %v4155_v11, %v4345_v47  ;;  %v1464_v47 = vrot.slane %v2905_v21, 1  ;;  %v973_v4 = vrot.slane %v2860_v43, 1  ;;  %v1149_v52 = vrot.slane %v2860_v43, 2 }
 0x1e6   : > { %v1680_v25 = vpop.permute.xlu1 %1679  ;;  %v1861_v50 = vsel %vm1842_vm6, %v1828_v18, %v1012_v48  ;;  %v1831_v18 = vsel %vm1809_vm5, %v4166_v5, %v4350_v7 }
 0x1e7   : > { %v1991_v56 = vsel %vm1974_vm10, %v1958_v59, %v1680_v25  ;;  %v1506_v55 = vpop.permute.xlu0 %1505  ;;  %v1465_v9 = vsel %vm397_vm0, %v1462_v12, %v1464_v47  ;;  %v974_v34 = vsel %vm397_vm0, %v1462_v12, %v973_v4  ;;  %v1150_v59 = vsel %vm574_vm1, %v1638_v45, %v1149_v52 }
 0x1e8   : > { %1699 = vrot.lane.b32.xlu1 %v1634_v26, %s3293_s27  ;;  %3124 = vmatprep.mubr.msk.f32.mxu0 %vm2019_vm11, %v1991_v56  ;;  %v1959_v38 = vsel %vm1941_vm9, %v1926_v41, %v1506_v55  ;;  %v1830_v41 = vsel %vm1809_vm5, %v4170_v24, %v4353_v35 }
 0x1e9   : > { %1525 = vrot.lane.b32.xlu0 %v1460_v40, %s3292_s26  ;;  %3182 = vmatprep.mubr.msk.f32.mxu1 %vm2019_vm11, %v1991_v56  ;;  %v1641_v40 = vsel %vm574_vm1, %v1638_v45, %v1640_v6  ;;  %v2908_v56 = vld [vmem:[%s3338_s19 + $0x1a8] sm:$0x3] }
 0x1ea   : > { %v1188_v15 = vpop.permute.xlu1 %1187 }
 0x1eb   : > { %v1014_v33 = vpop.permute.xlu0 %1013  ;;  %v1894_v63 = vsel %vm1875_vm7, %v1861_v50, %v1188_v15  ;;  %v1467_v15 = vrot.slane %v2907_v19, 1 }
 0x1ec   : > { %1207 = vrot.lane.b32.xlu1 %v1634_v26, %s3290_s5  ;;  %v1862_v48 = vsel %vm1842_vm6, %v1829_v16, %v1014_v33 }
 0x1ed   : > { %1033 = vrot.lane.b32.xlu0 %v969_v31, %s3289_s23  ;;  %v1469_v31 = vrot.slane %v2908_v56, 1 }
 0x1ee   : > { %v1190_v29 = vpop.permute.xlu1 %1189 }
 0x1ef   : > { %v1682_v0 = vpop.permute.xlu0 %1681  ;;  %v1895_v62 = vsel %vm1875_vm7, %v1862_v48, %v1190_v29  ;;  %v1470_v51 = vsel %vm397_vm0, %v1467_v15, %v1469_v31  ;;  %v1642_v29 = vrot.slane %v2906_v17, 2 }
 0x1f0   : > { %v1992_v60 = vsel %vm1974_vm10, %v1959_v38, %v1682_v0  ;;  %1209 = vrot.lane.b32.xlu1 %v1145_v14, %s3290_s5  ;;  %v1645_v14 = vrot.slane %v2908_v56, 2 }
 0x1f1   : > { %1701 = vrot.lane.b32.xlu0 %v1636_v2, %s3293_s27  ;;  %3125 = vmatmul.mubr.msk.f32.gmra.mrb[16].mxu0 %vm2019_vm11, %v1992_v60  ;;  %v1644_v12 = vsel %vm574_vm1, %v1642_v29, %v1643_v13 }
 0x1f2   : > { %3183 = vmatmul.mubr.msk.f32.gmra.mrb[16].mxu1 %vm2019_vm11, %v1992_v60  ;;  %v1318_v44 = vpop.permute.xlu1 %1317  ;;  %v1646_v8 = vsel %vm574_vm1, %v1643_v13, %v1645_v14 }
 0x1f3   : > { %v1316_v36 = vpop.permute.xlu0 %1315  ;;  %v1928_v46 = vsel %vm1908_vm8, %v1895_v62, %v1318_v44 }
 0x1f4   : > { %843 = vrot.lane.b32.xlu1 %v2858_v58, %s3288_s22  ;;  %v1927_v10 = vsel %vm1908_vm8, %v1894_v63, %v1316_v36 }
 0x1f5   : > { %1335 = vrot.lane.b32.xlu0 %v2858_v58, %s3291_s18  ;;  %v1468_v58 = vsel %vm397_vm0, %v1466_v1, %v1467_v15 }
 0x1f6   : > { %v4790_v3 = vpop.permute.xlu1 %1015 }
 0x1f7   : > { %v1508_v22 = vpop.permute.xlu0 %1507 }
 0x1f8   : > { %1527 = vrot.lane.b32.xlu1 %v1463_v42, %s3292_s26  ;;  %v1960_v27 = vsel %vm1941_vm9, %v1927_v10, %v1508_v22 }
 0x1f9   : > { %1337 = vrot.lane.b32.xlu0 %v2904_v61, %s3291_s18 }
 0x1fa   : > { %v1684_v11 = vpop.permute.xlu1 %1683 }
 0x1fb   : > { %v1993_v20 = vsel %vm1974_vm10, %v1960_v27, %v1684_v11  ;;  %v1510_v49 = vpop.permute.xlu0 %1509  ;;  %v4867_v11 = vld [vmem:[%s5173_s2] ss:$0 sm:$0xff] }
 0x1fc   : > { %1035 = vrot.lane.b32.xlu1 %v1463_v42, %s3289_s23  ;;  %3127 = vmatprep.mubr.msk.f32.mxu0 %vm2019_vm11, %v1993_v20  ;;  %v1961_v23 = vsel %vm1941_vm9, %v1928_v46, %v1510_v49 }
 0x1fd   : > { %845 = vrot.lane.b32.xlu0 %v2904_v61, %s3288_s22  ;;  %3185 = vmatprep.mubr.msk.f32.mxu1 %vm2019_vm11, %v1993_v20  ;;  %v1863_v61 = vsel %vm1842_vm6, %v1830_v41, %v4790_v3 }
 0x1fe   : > { %v1192_v39 = vpop.permute.xlu1 %1191 }
 0x1ff   : > { %v1018_v37 = vpop.permute.xlu0 %1017  ;;  %v1896_v0 = vsel %vm1875_vm7, %v1863_v61, %v1192_v39 }
 0x200   : > { %1703 = vrot.lane.b32.xlu1 %v1639_v54, %s3293_s27  ;;  %v1864_v50 = vsel %vm1842_vm6, %v1831_v18, %v1018_v37 }
 0x201   : > { %1529 = vrot.lane.b32.xlu0 %v1465_v9, %s3292_s26 }
 0x202   : > { %v1194_v57 = vpop.permute.xlu1 %1193 }
 0x203   : > { %v1686_v32 = vpop.permute.xlu0 %1685  ;;  %v1897_v22 = vsel %vm1875_vm7, %v1864_v50, %v1194_v57 }
 0x204   : > { %v1994_v26 = vsel %vm1974_vm10, %v1961_v23, %v1686_v32  ;;  %1211 = vrot.lane.b32.xlu1 %v1639_v54, %s3290_s5 }
 0x205   : > { %1037 = vrot.lane.b32.xlu0 %v974_v34, %s3289_s23  ;;  %3128 = vmatmul.mubr.msk.f32.gmra.mrb[18].mxu0 %vm2019_vm11, %v1994_v26  ;;  %s3015_s23 = sshll.u32 %s5340_s12, 9 }
 0x206   : > { %3186 = vmatmul.mubr.msk.f32.gmra.mrb[18].mxu1 %vm2019_vm11, %v1994_v26  ;;  %v828_v25 = vpop.permute.xlu1 %827  ;;  %s4876_s30 = scalar_lea.vmem %s5174_s3, %s3015_s23 }
 0x207   : > { %v1320_v55 = vpop.permute.xlu0 %1319  ;;  %v1832_v39 = vsel %vm1809_vm5, %v4187_v30, %v828_v25 }
 0x208   : > { %1213 = vrot.lane.b32.xlu1 %v1150_v59, %s3290_s5  ;;  %v1929_v60 = vsel %vm1908_vm8, %v1896_v0, %v1320_v55 }
 0x209   : > { %1705 = vrot.lane.b32.xlu0 %v1641_v40, %s3293_s27 }
 0x20a   : > { %v1512_v28 = vpop.permute.xlu1 %1511 }
 0x20b   : > { %v1322_v33 = vpop.permute.xlu0 %1321  ;;  %v1962_v24 = vsel %vm1941_vm9, %v1929_v60, %v1512_v28 }
 0x20c   : > { %1341 = vrot.lane.b32.xlu1 %v2907_v19, %s3291_s18  ;;  %v1930_v21 = vsel %vm1908_vm8, %v1897_v22, %v1322_v33  ;;  %v5326_v19 = vld [vmem:[#allocation4_spill] sm:$0xff] }
 0x20d   : > { %1339 = vrot.lane.b32.xlu0 %v2906_v17, %s3291_s18 }
 0x20e   : > { %v1020_v2 = vpop.permute.xlu1 %1019 }
 0x20f   : > { %v4838_v38 = vpop.permute.xlu0 %829  ;;  %v1865_v48 = vsel %vm1842_vm6, %v1832_v39, %v1020_v2 }
 0x210   : > { %1533 = vrot.lane.b32.xlu1 %v1470_v51, %s3292_s26  ;;  %v1833_v56 = vsel %vm1809_vm5, %v5326_v19, %v4838_v38 }
 0x211   : > { %1531 = vrot.lane.b32.xlu0 %v1468_v58, %s3292_s26 }
 0x212   : > { %v1688_v35 = vpop.permute.xlu1 %1687 }
 0x213   : > { %v1995_v44 = vsel %vm1974_vm10, %v1962_v24, %v1688_v35  ;;  %v1514_v36 = vpop.permute.xlu0 %1513 }
 0x214   : > { %1709 = vrot.lane.b32.xlu1 %v1646_v8, %s3293_s27  ;;  %3130 = vmatprep.mubr.msk.f32.mxu0 %vm2019_vm11, %v1995_v44  ;;  %v1963_v10 = vsel %vm1941_vm9, %v1930_v21, %v1514_v36 }
 0x215   : > { %1707 = vrot.lane.b32.xlu0 %v1644_v12, %s3293_s27  ;;  %3188 = vmatprep.mubr.msk.f32.mxu1 %vm2019_vm11, %v1995_v44 }
 0x216   : > { %v1196_v42 = vpop.permute.xlu1 %1195 }
 0x217   : > { %v1022_v3 = vpop.permute.xlu0 %1021  ;;  %v1898_v46 = vsel %vm1875_vm7, %v1865_v48, %v1196_v42  ;;  %v5327_v42 = vld [vmem:[#allocation6_spill] sm:$0xff] }
 0x218   : > { %v1866_v17 = vsel %vm1842_vm6, %v1833_v56, %v1022_v3  ;;  %v5329_v56 = vld [vmem:[#allocation52_spill] sm:$0xff] }
 0x21a   : > { %v1198_v63 = vpop.permute.xlu1 %1197 }
 0x21b   : > { %v1690_v53 = vpop.permute.xlu0 %1689  ;;  %v1899_v15 = vsel %vm1875_vm7, %v1866_v17, %v1198_v63 }
 0x21c   : > { %v1996_v45 = vsel %vm1974_vm10, %v1963_v10, %v1690_v53 }
 0x21d   : > { %3131 = vmatmul.mubr.msk.f32.gmra.mrb[20].mxu0 %vm2019_vm11, %v1996_v45  ;;  %3189 = vmatmul.mubr.msk.f32.gmra.mrb[20].mxu1 %vm2019_vm11, %v1996_v45 }
 0x21e   : > { %v4862_v27 = vpop.permute.xlu1 %831 }
 0x21f   : > { %v1324_v5 = vpop.permute.xlu0 %1323  ;;  %v1834_v18 = vsel %vm1809_vm5, %v5327_v42, %v4862_v27 }
 0x220   : > { %v1931_v6 = vsel %vm1908_vm8, %v1898_v46, %v1324_v5 }
 0x222   : > { %v1516_v7 = vpop.permute.xlu1 %1515 }
 0x223   : > { %v1326_v47 = vpop.permute.xlu0 %1325  ;;  %v1964_v32 = vsel %vm1941_vm9, %v1931_v6, %v1516_v7  ;;  %v5328_v7 = vld [vmem:[#allocation2_spill] sm:$0xff] }
 0x224   : > { %v3102_v20 = vpop.f32.mrb[0].mxu0  ;;  %v1932_v31 = vsel %vm1908_vm8, %v1899_v15, %v1326_v47 }
 0x225   : > { %v2192_v49 = vadd.f32 %v3102_v20, %v4867_v11  ;;  %v3160_v43 = vpop.f32.mrb[0].mxu1  ;;  %v2186_v54 = vpop.f32.mrb[1].mxu0 }
 0x226   : > { %v2490_v9 = vadd.f32 %v3160_v43, %v4867_v11  ;;  %v2187_v4 = vadd.f32 %v4867_v11, %v2186_v54  ;;  %v2484_v16 = vpop.f32.mrb[1].mxu1  ;;  %v1024_v37 = vpop.permute.xlu1 %1023 }
 0x227   : > { %v2346_v62 = vmax.f32 %v2192_v49, 0.0  ;;  %v2485_v30 = vadd.f32 %v4867_v11, %v2484_v16  ;;  %v834_v52 = vpop.permute.xlu0 %833  ;;  %v1867_v50 = vsel %vm1842_vm6, %v1834_v18, %v1024_v37 }
 0x228   : > { %v2644_v57 = vmax.f32 %v2490_v9, 0.0  ;;  %v2345_v34 = vmax.f32 %v2187_v4, 0.0  ;;  %v1835_v47 = vsel %vm1809_vm5, %v5328_v7, %v834_v52 }
 0x229   : > { %2378 = vst.msk [vmem:[%s4876_s30 + $0x8] sm:$0xff] %vm1842_vm6, %v2346_v62  ;;  %v2643_v23 = vmax.f32 %v2485_v30, 0.0 }
 0x22a   : > { %2982 = vst.msk [vmem:[%s4876_s30 + $0x18] sm:$0xff] %vm1842_vm6, %v2644_v57  ;;  %2377 = vst.msk [vmem:[%s4876_s30] sm:$0xff] %vm1842_vm6, %v2345_v34  ;;  %v1692_v26 = vpop.permute.xlu1 %1691 }
 0x22b   : > { %2981 = vst.msk [vmem:[%s4876_s30 + $0x10] sm:$0xff] %vm1842_vm6, %v2643_v23  ;;  %v1997_v59 = vsel %vm1974_vm10, %v1964_v32, %v1692_v26  ;;  %v1518_v25 = vpop.permute.xlu0 %1517 }
 0x22c   : > { %3133 = vmatprep.mubr.msk.f32.mxu0 %vm2019_vm11, %v1997_v59  ;;  %3191 = vmatprep.mubr.msk.f32.mxu1 %vm2019_vm11, %v1997_v59  ;;  %v1965_v1 = vsel %vm1941_vm9, %v1932_v31, %v1518_v25 }
 0x22e   : > { %v1200_v40 = vpop.permute.xlu1 %1199 }
 0x22f   : > { %v1026_v55 = vpop.permute.xlu0 %1025  ;;  %v1900_v21 = vsel %vm1875_vm7, %v1867_v50, %v1200_v40 }
 0x230   : > { %v1868_v49 = vsel %vm1842_vm6, %v1835_v47, %v1026_v55  ;;  %v5331_v47 = vld [vmem:[#allocation46_spill] sm:$0xff] }
 0x232   : > { %v1202_v28 = vpop.permute.xlu1 %1201 }
 0x233   : > { %v1694_v33 = vpop.permute.xlu0 %1693  ;;  %v1901_v43 = vsel %vm1875_vm7, %v1868_v49, %v1202_v28 }
 0x234   : > { %v1998_v13 = vsel %vm1974_vm10, %v1965_v1, %v1694_v33 }
 0x235   : > { %3134 = vmatmul.mubr.msk.f32.gmra.mrb[22].mxu0 %vm2019_vm11, %v1998_v13  ;;  %3192 = vmatmul.mubr.msk.f32.gmra.mrb[22].mxu1 %vm2019_vm11, %v1998_v13 }
 0x236   : > { %v4906_v51 = vpop.permute.xlu1 %835 }
 0x237   : > { %v1328_v14 = vpop.permute.xlu0 %1327  ;;  %v1836_v55 = vsel %vm1809_vm5, %v5329_v56, %v4906_v51  ;;  %v5330_v51 = vld [vmem:[#allocation3_spill] sm:$0xff] }
 0x238   : > { %v3105_v41 = vpop.f32.mrb[2].mxu0  ;;  %v1933_v63 = vsel %vm1908_vm8, %v1900_v21, %v1328_v14 }
 0x239   : > { %v2202_v29 = vadd.f32 %v3105_v41, %v4867_v11  ;;  %v3163_v2 = vpop.f32.mrb[2].mxu1  ;;  %v2196_v58 = vpop.f32.mrb[3].mxu0 }
 0x23a   : > { %v2500_v61 = vadd.f32 %v3163_v2, %v4867_v11  ;;  %v2197_v38 = vadd.f32 %v4867_v11, %v2196_v58  ;;  %v2494_v0 = vpop.f32.mrb[3].mxu1  ;;  %v1520_v60 = vpop.permute.xlu1 %1519 }
 0x23b   : > { %v2348_v8 = vmax.f32 %v2202_v29, 0.0  ;;  %v2495_v24 = vadd.f32 %v4867_v11, %v2494_v0  ;;  %v1330_v35 = vpop.permute.xlu0 %1329  ;;  %v1966_v10 = vsel %vm1941_vm9, %v1933_v63, %v1520_v60 }
 0x23c   : > { %v2646_v12 = vmax.f32 %v2500_v61, 0.0  ;;  %v2347_v44 = vmax.f32 %v2197_v38, 0.0  ;;  %v1934_v54 = vsel %vm1908_vm8, %v1901_v43, %v1330_v35 }
 0x23d   : > { %2380 = vst.msk [vmem:[%s4876_s30 + $0x28] sm:$0xff] %vm1842_vm6, %v2348_v8  ;;  %v2645_v36 = vmax.f32 %v2495_v24, 0.0 }
 0x23e   : > { %2984 = vst.msk [vmem:[%s4876_s30 + $0x38] sm:$0xff] %vm1842_vm6, %v2646_v12  ;;  %2379 = vst.msk [vmem:[%s4876_s30 + $0x20] sm:$0xff] %vm1842_vm6, %v2347_v44  ;;  %v1028_v3 = vpop.permute.xlu1 %1027 }
 0x23f   : > { %2983 = vst.msk [vmem:[%s4876_s30 + $0x30] sm:$0xff] %vm1842_vm6, %v2645_v36  ;;  %v838_v22 = vpop.permute.xlu0 %837  ;;  %v1869_v15 = vsel %vm1842_vm6, %v1836_v55, %v1028_v3 }
 0x240   : > { %v1837_v2 = vsel %vm1809_vm5, %v5330_v51, %v838_v22 }
 0x242   : > { %v1696_v53 = vpop.permute.xlu1 %1695 }
 0x243   : > { %v1999_v45 = vsel %vm1974_vm10, %v1966_v10, %v1696_v53  ;;  %v1522_v27 = vpop.permute.xlu0 %1521 }
 0x244   : > { %3136 = vmatprep.mubr.msk.f32.mxu0 %vm2019_vm11, %v1999_v45  ;;  %3194 = vmatprep.mubr.msk.f32.mxu1 %vm2019_vm11, %v1999_v45  ;;  %v1967_v9 = vsel %vm1941_vm9, %v1934_v54, %v1522_v27 }
 0x246   : > { %v1204_v5 = vpop.permute.xlu1 %1203 }
 0x247   : > { %v1030_v20 = vpop.permute.xlu0 %1029  ;;  %v1902_v28 = vsel %vm1875_vm7, %v1869_v15, %v1204_v5 }
 0x248   : > { %v1870_v61 = vsel %vm1842_vm6, %v1837_v2, %v1030_v20 }
 0x24a   : > { %v1206_v39 = vpop.permute.xlu1 %1205 }
 0x24b   : > { %v1698_v4 = vpop.permute.xlu0 %1697  ;;  %v1903_v0 = vsel %vm1875_vm7, %v1870_v61, %v1206_v39 }
 0x24c   : > { %v2000_v16 = vsel %vm1974_vm10, %v1967_v9, %v1698_v4  ;;  %v3108_v37 = vpop.f32.mrb[4].mxu0 }
 0x24d   : > { %v2212_v48 = vadd.f32 %v3108_v37, %v4867_v11  ;;  %v3166_v62 = vpop.f32.mrb[4].mxu1  ;;  %v2206_v30 = vpop.f32.mrb[5].mxu0  ;;  %3137 = vmatmul.mubr.msk.f32.gmra.mrb[24].mxu0 %vm2019_vm11, %v2000_v16  ;;  %3195 = vmatmul.mubr.msk.f32.gmra.mrb[24].mxu1 %vm2019_vm11, %v2000_v16 }
 0x24e   : > { %v2510_v52 = vadd.f32 %v3166_v62, %v4867_v11  ;;  %v2207_v46 = vadd.f32 %v4867_v11, %v2206_v30  ;;  %v2504_v57 = vpop.f32.mrb[5].mxu1  ;;  %v840_v34 = vpop.permute.xlu1 %839 }
 0x24f   : > { %v2350_v6 = vmax.f32 %v2212_v48, 0.0  ;;  %v2505_v23 = vadd.f32 %v4867_v11, %v2504_v57  ;;  %v1332_v32 = vpop.permute.xlu0 %1331  ;;  %v1838_v20 = vsel %vm1809_vm5, %v5331_v47, %v840_v34 }
 0x250   : > { %v2648_v26 = vmax.f32 %v2510_v52, 0.0  ;;  %v2349_v59 = vmax.f32 %v2207_v46, 0.0  ;;  %v1935_v1 = vsel %vm1908_vm8, %v1902_v28, %v1332_v32  ;;  %v5332_v32 = vld [vmem:[#allocation24_spill] sm:$0xff] }
 0x251   : > { %2382 = vst.msk [vmem:[%s4876_s30 + $0x48] sm:$0xff] %vm1842_vm6, %v2350_v6  ;;  %v2647_v25 = vmax.f32 %v2505_v23, 0.0 }
 0x252   : > { %2986 = vst.msk [vmem:[%s4876_s30 + $0x58] sm:$0xff] %vm1842_vm6, %v2648_v26  ;;  %2381 = vst.msk [vmem:[%s4876_s30 + $0x40] sm:$0xff] %vm1842_vm6, %v2349_v59  ;;  %v1524_v40 = vpop.permute.xlu1 %1523 }
 0x253   : > { %2985 = vst.msk [vmem:[%s4876_s30 + $0x50] sm:$0xff] %vm1842_vm6, %v2647_v25  ;;  %v1334_v19 = vpop.permute.xlu0 %1333  ;;  %v1968_v33 = vsel %vm1941_vm9, %v1935_v1, %v1524_v40 }
 0x254   : > { %v1936_v35 = vsel %vm1908_vm8, %v1903_v0, %v1334_v19 }
 0x256   : > { %v1032_v17 = vpop.permute.xlu1 %1031 }
 0x257   : > { %v842_v31 = vpop.permute.xlu0 %841  ;;  %v1871_v43 = vsel %vm1842_vm6, %v1838_v20, %v1032_v17 }
 0x258   : > { %v1839_v26 = vsel %vm1809_vm5, %v5332_v32, %v842_v31 }
 0x25a   : > { %v1700_v13 = vpop.permute.xlu1 %1699 }
 0x25b   : > { %v2001_v14 = vsel %vm1974_vm10, %v1968_v33, %v1700_v13  ;;  %v1526_v41 = vpop.permute.xlu0 %1525 }
 0x25c   : > { %3139 = vmatprep.mubr.msk.f32.mxu0 %vm2019_vm11, %v2001_v14  ;;  %3197 = vmatprep.mubr.msk.f32.mxu1 %vm2019_vm11, %v2001_v14  ;;  %v1969_v18 = vsel %vm1941_vm9, %v1936_v35, %v1526_v41 }
 0x25e   : > { %v1208_v29 = vpop.permute.xlu1 %1207 }
 0x25f   : > { %v1034_v58 = vpop.permute.xlu0 %1033  ;;  %v1904_v39 = vsel %vm1875_vm7, %v1871_v43, %v1208_v29  ;;  %v5333_v29 = vld [vmem:[#allocation20_spill] sm:$0xff] }
 0x260   : > { %v3111_v38 = vpop.f32.mrb[6].mxu0  ;;  %v1872_v19 = vsel %vm1842_vm6, %v1839_v26, %v1034_v58  ;;  %v5334_v58 = vld [vmem:[#allocation47_spill] sm:$0xff] }
 0x261   : > { %v2222_v60 = vadd.f32 %v3111_v38, %v4867_v11  ;;  %v3169_v8 = vpop.f32.mrb[6].mxu1  ;;  %v2216_v24 = vpop.f32.mrb[7].mxu0 }
 0x262   : > { %v2520_v12 = vadd.f32 %v3169_v8, %v4867_v11  ;;  %v2217_v44 = vadd.f32 %v4867_v11, %v2216_v24  ;;  %v2514_v36 = vpop.f32.mrb[7].mxu1  ;;  %v1210_v42 = vpop.permute.xlu1 %1209 }
 0x263   : > { %v2352_v3 = vmax.f32 %v2222_v60, 0.0  ;;  %v2515_v50 = vadd.f32 %v4867_v11, %v2514_v36  ;;  %v1702_v22 = vpop.permute.xlu0 %1701  ;;  %v1905_v17 = vsel %vm1875_vm7, %v1872_v19, %v1210_v42 }
 0x264   : > { %v2650_v21 = vmax.f32 %v2520_v12, 0.0  ;;  %v2351_v63 = vmax.f32 %v2217_v44, 0.0  ;;  %v2002_v10 = vsel %vm1974_vm10, %v1969_v18, %v1702_v22 }
 0x265   : > { %2384 = vst.msk [vmem:[%s4876_s30 + $0x68] sm:$0xff] %vm1842_vm6, %v2352_v3  ;;  %v2649_v53 = vmax.f32 %v2515_v50, 0.0  ;;  %3140 = vmatmul.mubr.msk.f32.gmra.mrb[26].mxu0 %vm2019_vm11, %v2002_v10  ;;  %3198 = vmatmul.mubr.msk.f32.gmra.mrb[26].mxu1 %vm2019_vm11, %v2002_v10 }
 0x266   : > { %2988 = vst.msk [vmem:[%s4876_s30 + $0x78] sm:$0xff] %vm1842_vm6, %v2650_v21  ;;  %2383 = vst.msk [vmem:[%s4876_s30 + $0x60] sm:$0xff] %vm1842_vm6, %v2351_v63  ;;  %v844_v45 = vpop.permute.xlu1 %843 }
 0x267   : > { %2987 = vst.msk [vmem:[%s4876_s30 + $0x70] sm:$0xff] %vm1842_vm6, %v2649_v53  ;;  %v1336_v27 = vpop.permute.xlu0 %1335  ;;  %v1840_v61 = vsel %vm1809_vm5, %v5334_v58, %v844_v45 }
 0x268   : > { %v1937_v9 = vsel %vm1908_vm8, %v1904_v39, %v1336_v27 }
 0x26a   : > { %v1528_v5 = vpop.permute.xlu1 %1527 }
 0x26b   : > { %v1338_v7 = vpop.permute.xlu0 %1337  ;;  %v1970_v4 = vsel %vm1941_vm9, %v1937_v9, %v1528_v5 }
 0x26c   : > { %v1938_v28 = vsel %vm1908_vm8, %v1905_v17, %v1338_v7 }
 0x26e   : > { %v1036_v49 = vpop.permute.xlu1 %1035 }
 0x26f   : > { %v846_v54 = vpop.permute.xlu0 %845  ;;  %v1873_v60 = vsel %vm1842_vm6, %v1840_v61, %v1036_v49 }
 0x270   : > { %v1841_v51 = vsel %vm1809_vm5, %v5333_v29, %v846_v54 }
 0x272   : > { %v1704_v16 = vpop.permute.xlu1 %1703 }
 0x273   : > { %v2003_v37 = vsel %vm1974_vm10, %v1970_v4, %v1704_v16  ;;  %v1530_v48 = vpop.permute.xlu0 %1529 }
 0x274   : > { %v3114_v62 = vpop.f32.mrb[8].mxu0  ;;  %3142 = vmatprep.mubr.msk.f32.mxu0 %vm2019_vm11, %v2003_v37  ;;  %3200 = vmatprep.mubr.msk.f32.mxu1 %vm2019_vm11, %v2003_v37  ;;  %v1971_v1 = vsel %vm1941_vm9, %v1938_v28, %v1530_v48 }
 0x275   : > { %v2232_v30 = vadd.f32 %v3114_v62, %v4867_v11  ;;  %v3172_v52 = vpop.f32.mrb[8].mxu1  ;;  %v2226_v46 = vpop.f32.mrb[9].mxu0 }
 0x276   : > { %v2530_v57 = vadd.f32 %v3172_v52, %v4867_v11  ;;  %v2227_v34 = vadd.f32 %v4867_v11, %v2226_v46  ;;  %v2524_v6 = vpop.f32.mrb[9].mxu1  ;;  %v1212_v23 = vpop.permute.xlu1 %1211 }
 0x277   : > { %v2354_v59 = vmax.f32 %v2232_v30, 0.0  ;;  %v2525_v25 = vadd.f32 %v4867_v11, %v2524_v6  ;;  %v1038_v40 = vpop.permute.xlu0 %1037  ;;  %v1906_v24 = vsel %vm1875_vm7, %v1873_v60, %v1212_v23 }
 0x278   : > { %v2652_v56 = vmax.f32 %v2530_v57, 0.0  ;;  %v2353_v55 = vmax.f32 %v2227_v34, 0.0  ;;  %v1874_v38 = vsel %vm1842_vm6, %v1841_v51, %v1038_v40 }
 0x279   : > { %2386 = vst.msk [vmem:[%s4876_s30 + $0x88] sm:$0xff] %vm1842_vm6, %v2354_v59  ;;  %v2651_v15 = vmax.f32 %v2525_v25, 0.0 }
 0x27a   : > { %2990 = vst.msk [vmem:[%s4876_s30 + $0x98] sm:$0xff] %vm1842_vm6, %v2652_v56  ;;  %2385 = vst.msk [vmem:[%s4876_s30 + $0x80] sm:$0xff] %vm1842_vm6, %v2353_v55  ;;  %v1214_v31 = vpop.permute.xlu1 %1213 }
 0x27b   : > { %2989 = vst.msk [vmem:[%s4876_s30 + $0x90] sm:$0xff] %vm1842_vm6, %v2651_v15  ;;  %v1706_v33 = vpop.permute.xlu0 %1705  ;;  %v1907_v8 = vsel %vm1875_vm7, %v1874_v38, %v1214_v31 }
 0x27c   : > { %v2004_v13 = vsel %vm1974_vm10, %v1971_v1, %v1706_v33 }
 0x27d   : > { %3143 = vmatmul.mubr.msk.f32.gmra.mrb[28].mxu0 %vm2019_vm11, %v2004_v13  ;;  %3201 = vmatmul.mubr.msk.f32.gmra.mrb[28].mxu1 %vm2019_vm11, %v2004_v13 }
 0x27e   : > { %v1342_v14 = vpop.permute.xlu1 %1341 }
 0x27f   : > { %v1340_v41 = vpop.permute.xlu0 %1339  ;;  %v1940_v35 = vsel %vm1908_vm8, %v1907_v8, %v1342_v14 }
 0x280   : > { %v1939_v12 = vsel %vm1908_vm8, %v1906_v24, %v1340_v41 }
 0x282   : > { %v1534_v2 = vpop.permute.xlu1 %1533 }
 0x283   : > { %v1532_v0 = vpop.permute.xlu0 %1531  ;;  %v1973_v44 = vsel %vm1941_vm9, %v1940_v35, %v1534_v2 }
 0x284   : > { %v1972_v42 = vsel %vm1941_vm9, %v1939_v12, %v1532_v0 }
 0x286   : > { %v1710_v36 = vpop.permute.xlu1 %1709 }
 0x287   : > { %v2006_v18 = vsel %vm1974_vm10, %v1973_v44, %v1710_v36  ;;  %v1708_v3 = vpop.permute.xlu0 %1707 }
 0x288   : > { %v2005_v50 = vsel %vm1974_vm10, %v1972_v42, %v1708_v3  ;;  %v3117_v22 = vpop.f32.mrb[10].mxu0 }
 0x289   : > { %v2242_v21 = vadd.f32 %v3117_v22, %v4867_v11  ;;  %v3175_v63 = vpop.f32.mrb[10].mxu1  ;;  %v2236_v10 = vpop.f32.mrb[11].mxu0  ;;  %3145 = vmatprep.mubr.msk.f32.mxu0 %vm2019_vm11, %v2005_v50  ;;  %3203 = vmatprep.mubr.msk.f32.mxu1 %vm2019_vm11, %v2005_v50 }
 0x28a   : > { %v2540_v53 = vadd.f32 %v3175_v63, %v4867_v11  ;;  %v2237_v45 = vadd.f32 %v4867_v11, %v2236_v10  ;;  %v2534_v27 = vpop.f32.mrb[11].mxu1  ;;  %3146 = vmatmul.mubr.msk.f32.gmra.mrb[30].mxu0 %vm2019_vm11, %v2006_v18  ;;  %3204 = vmatmul.mubr.msk.f32.gmra.mrb[30].mxu1 %vm2019_vm11, %v2006_v18 }
 0x28b   : > { %v2356_v5 = vmax.f32 %v2242_v21, 0.0  ;;  %v2535_v7 = vadd.f32 %v4867_v11, %v2534_v27 }
 0x28c   : > { %v2654_v47 = vmax.f32 %v2540_v53, 0.0  ;;  %v2355_v20 = vmax.f32 %v2237_v45, 0.0 }
 0x28d   : > { %2388 = vst.msk [vmem:[%s4876_s30 + $0xa8] sm:$0xff] %vm1842_vm6, %v2356_v5  ;;  %v2653_v49 = vmax.f32 %v2535_v7, 0.0 }
 0x28e   : > { %2992 = vst.msk [vmem:[%s4876_s30 + $0xb8] sm:$0xff] %vm1842_vm6, %v2654_v47  ;;  %2387 = vst.msk [vmem:[%s4876_s30 + $0xa0] sm:$0xff] %vm1842_vm6, %v2355_v20 }
 0x28f   : > { %2991 = vst.msk [vmem:[%s4876_s30 + $0xb0] sm:$0xff] %vm1842_vm6, %v2653_v49 }
 0x29c   : > { %v3120_v43 = vpop.f32.mrb[12].mxu0 }
 0x29d   : > { %v2252_v54 = vadd.f32 %v3120_v43, %v4867_v11  ;;  %v3178_v39 = vpop.f32.mrb[12].mxu1  ;;  %v2246_v9 = vpop.f32.mrb[13].mxu0 }
 0x29e   : > { %v2550_v4 = vadd.f32 %v3178_v39, %v4867_v11  ;;  %v2247_v16 = vadd.f32 %v4867_v11, %v2246_v9  ;;  %v2544_v37 = vpop.f32.mrb[13].mxu1 }
 0x29f   : > { %v2358_v48 = vmax.f32 %v2252_v54, 0.0  ;;  %v2545_v62 = vadd.f32 %v4867_v11, %v2544_v37 }
 0x2a0   : > { %v2656_v30 = vmax.f32 %v2550_v4, 0.0  ;;  %v2357_v52 = vmax.f32 %v2247_v16, 0.0 }
 0x2a1   : > { %2390 = vst.msk [vmem:[%s4876_s30 + $0xc8] sm:$0xff] %vm1842_vm6, %v2358_v48  ;;  %v2655_v46 = vmax.f32 %v2545_v62, 0.0 }
 0x2a2   : > { %2994 = vst.msk [vmem:[%s4876_s30 + $0xd8] sm:$0xff] %vm1842_vm6, %v2656_v30  ;;  %2389 = vst.msk [vmem:[%s4876_s30 + $0xc0] sm:$0xff] %vm1842_vm6, %v2357_v52 }
 0x2a3   : > { %2993 = vst.msk [vmem:[%s4876_s30 + $0xd0] sm:$0xff] %vm1842_vm6, %v2655_v46 }
 0x2b0   : > { %v3123_v57 = vpop.f32.mrb[14].mxu0 }
 0x2b1   : > { %v2262_v34 = vadd.f32 %v3123_v57, %v4867_v11  ;;  %v3181_v6 = vpop.f32.mrb[14].mxu1  ;;  %v2256_v23 = vpop.f32.mrb[15].mxu0 }
 0x2b2   : > { %v2560_v32 = vadd.f32 %v3181_v6, %v4867_v11  ;;  %v2257_v26 = vadd.f32 %v4867_v11, %v2256_v23  ;;  %v2554_v59 = vpop.f32.mrb[15].mxu1 }
 0x2b3   : > { %v2360_v25 = vmax.f32 %v2262_v34, 0.0  ;;  %v2555_v40 = vadd.f32 %v4867_v11, %v2554_v59 }
 0x2b4   : > { %v2658_v19 = vmax.f32 %v2560_v32, 0.0  ;;  %v2359_v56 = vmax.f32 %v2257_v26, 0.0 }
 0x2b5   : > { %2392 = vst.msk [vmem:[%s4876_s30 + $0xe8] sm:$0xff] %vm1842_vm6, %v2360_v25  ;;  %v2657_v55 = vmax.f32 %v2555_v40, 0.0 }
 0x2b6   : > { %2996 = vst.msk [vmem:[%s4876_s30 + $0xf8] sm:$0xff] %vm1842_vm6, %v2658_v19  ;;  %2391 = vst.msk [vmem:[%s4876_s30 + $0xe0] sm:$0xff] %vm1842_vm6, %v2359_v56 }
 0x2b7   : > { %2995 = vst.msk [vmem:[%s4876_s30 + $0xf0] sm:$0xff] %vm1842_vm6, %v2657_v55 }
 0x2c4   : > { %v3126_v17 = vpop.f32.mrb[16].mxu0 }
 0x2c5   : > { %v2272_v15 = vadd.f32 %v3126_v17, %v4867_v11  ;;  %v3184_v28 = vpop.f32.mrb[16].mxu1  ;;  %v2266_v31 = vpop.f32.mrb[17].mxu0 }
 0x2c6   : > { %v2570_v1 = vadd.f32 %v3184_v28, %v4867_v11  ;;  %v2267_v33 = vadd.f32 %v4867_v11, %v2266_v31  ;;  %v2564_v13 = vpop.f32.mrb[17].mxu1 }
 0x2c7   : > { %v2362_v14 = vmax.f32 %v2272_v15, 0.0  ;;  %v2565_v41 = vadd.f32 %v4867_v11, %v2564_v13 }
 0x2c8   : > { %v2660_v29 = vmax.f32 %v2570_v1, 0.0  ;;  %v2361_v51 = vmax.f32 %v2267_v33, 0.0 }
 0x2c9   : > { %2394 = vst.msk [vmem:[%s4876_s30 + $0x108] sm:$0xff] %vm1842_vm6, %v2362_v14  ;;  %v2659_v2 = vmax.f32 %v2565_v41, 0.0 }
 0x2ca   : > { %2998 = vst.msk [vmem:[%s4876_s30 + $0x118] sm:$0xff] %vm1842_vm6, %v2660_v29  ;;  %2393 = vst.msk [vmem:[%s4876_s30 + $0x100] sm:$0xff] %vm1842_vm6, %v2361_v51 }
 0x2cb   : > { %2997 = vst.msk [vmem:[%s4876_s30 + $0x110] sm:$0xff] %vm1842_vm6, %v2659_v2 }
 0x2d8   : > { %v3129_v58 = vpop.f32.mrb[18].mxu0 }
 0x2d9   : > { %v2282_v61 = vadd.f32 %v3129_v58, %v4867_v11  ;;  %v3187_v38 = vpop.f32.mrb[18].mxu1  ;;  %v2276_v0 = vpop.f32.mrb[19].mxu0 }
 0x2da   : > { %v2580_v60 = vadd.f32 %v3187_v38, %v4867_v11  ;;  %v2277_v8 = vadd.f32 %v4867_v11, %v2276_v0  ;;  %v2574_v24 = vpop.f32.mrb[19].mxu1 }
 0x2db   : > { %v2364_v35 = vmax.f32 %v2282_v61, 0.0  ;;  %v2575_v12 = vadd.f32 %v4867_v11, %v2574_v24 }
 0x2dc   : > { %v2662_v44 = vmax.f32 %v2580_v60, 0.0  ;;  %v2363_v36 = vmax.f32 %v2277_v8, 0.0 }
 0x2dd   : > { %2396 = vst.msk [vmem:[%s4876_s30 + $0x128] sm:$0xff] %vm1842_vm6, %v2364_v35  ;;  %v2661_v42 = vmax.f32 %v2575_v12, 0.0 }
 0x2de   : > { %3000 = vst.msk [vmem:[%s4876_s30 + $0x138] sm:$0xff] %vm1842_vm6, %v2662_v44  ;;  %2395 = vst.msk [vmem:[%s4876_s30 + $0x120] sm:$0xff] %vm1842_vm6, %v2363_v36 }
 0x2df   : > { %2999 = vst.msk [vmem:[%s4876_s30 + $0x130] sm:$0xff] %vm1842_vm6, %v2661_v42 }
 0x2f0   : > { %v3132_v18 = vpop.f32.mrb[20].mxu0  ;;  %v3190_v3 = vpop.f32.mrb[20].mxu1 }
 0x2f1   : > { %v2292_v50 = vadd.f32 %v3132_v18, %v4867_v11  ;;  %v2590_v22 = vadd.f32 %v3190_v3, %v4867_v11  ;;  %v2286_v21 = vpop.f32.mrb[21].mxu0  ;;  %v2584_v63 = vpop.f32.mrb[21].mxu1 }
 0x2f2   : > { %v2287_v10 = vadd.f32 %v4867_v11, %v2286_v21  ;;  %v2585_v53 = vadd.f32 %v4867_v11, %v2584_v63 }
 0x2f3   : > { %v2366_v45 = vmax.f32 %v2292_v50, 0.0  ;;  %v2664_v27 = vmax.f32 %v2590_v22, 0.0 }
 0x2f4   : > { %v2365_v5 = vmax.f32 %v2287_v10, 0.0  ;;  %v2663_v7 = vmax.f32 %v2585_v53, 0.0 }
 0x2f5   : > { %2398 = vst.msk [vmem:[%s4876_s30 + $0x148] sm:$0xff] %vm1842_vm6, %v2366_v45  ;;  %3002 = vst.msk [vmem:[%s4876_s30 + $0x158] sm:$0xff] %vm1842_vm6, %v2664_v27 }
 0x2f6   : > { %2397 = vst.msk [vmem:[%s4876_s30 + $0x140] sm:$0xff] %vm1842_vm6, %v2365_v5  ;;  %3001 = vst.msk [vmem:[%s4876_s30 + $0x150] sm:$0xff] %vm1842_vm6, %v2663_v7 }
 0x308   : > { %v3135_v47 = vpop.f32.mrb[22].mxu0  ;;  %v3193_v20 = vpop.f32.mrb[22].mxu1 }
 0x309   : > { %v2302_v49 = vadd.f32 %v3135_v47, %v4867_v11  ;;  %v2600_v43 = vadd.f32 %v3193_v20, %v4867_v11  ;;  %v2296_v54 = vpop.f32.mrb[23].mxu0  ;;  %v2594_v39 = vpop.f32.mrb[23].mxu1 }
 0x30a   : > { %v2297_v9 = vadd.f32 %v4867_v11, %v2296_v54  ;;  %v2595_v4 = vadd.f32 %v4867_v11, %v2594_v39 }
 0x30b   : > { %v2368_v16 = vmax.f32 %v2302_v49, 0.0  ;;  %v2666_v37 = vmax.f32 %v2600_v43, 0.0 }
 0x30c   : > { %v2367_v48 = vmax.f32 %v2297_v9, 0.0  ;;  %v2665_v62 = vmax.f32 %v2595_v4, 0.0 }
 0x30d   : > { %2400 = vst.msk [vmem:[%s4876_s30 + $0x168] sm:$0xff] %vm1842_vm6, %v2368_v16  ;;  %3004 = vst.msk [vmem:[%s4876_s30 + $0x178] sm:$0xff] %vm1842_vm6, %v2666_v37 }
 0x30e   : > { %2399 = vst.msk [vmem:[%s4876_s30 + $0x160] sm:$0xff] %vm1842_vm6, %v2367_v48  ;;  %3003 = vst.msk [vmem:[%s4876_s30 + $0x170] sm:$0xff] %vm1842_vm6, %v2665_v62 }
 0x320   : > { %v3138_v30 = vpop.f32.mrb[24].mxu0  ;;  %v3196_v52 = vpop.f32.mrb[24].mxu1 }
 0x321   : > { %v2312_v46 = vadd.f32 %v3138_v30, %v4867_v11  ;;  %v2610_v57 = vadd.f32 %v3196_v52, %v4867_v11  ;;  %v2306_v34 = vpop.f32.mrb[25].mxu0  ;;  %v2604_v6 = vpop.f32.mrb[25].mxu1 }
 0x322   : > { %v2307_v23 = vadd.f32 %v4867_v11, %v2306_v34  ;;  %v2605_v32 = vadd.f32 %v4867_v11, %v2604_v6 }
 0x323   : > { %v2370_v26 = vmax.f32 %v2312_v46, 0.0  ;;  %v2668_v59 = vmax.f32 %v2610_v57, 0.0 }
 0x324   : > { %v2369_v25 = vmax.f32 %v2307_v23, 0.0  ;;  %v2667_v40 = vmax.f32 %v2605_v32, 0.0 }
 0x325   : > { %2402 = vst.msk [vmem:[%s4876_s30 + $0x188] sm:$0xff] %vm1842_vm6, %v2370_v26  ;;  %3006 = vst.msk [vmem:[%s4876_s30 + $0x198] sm:$0xff] %vm1842_vm6, %v2668_v59 }
 0x326   : > { %2401 = vst.msk [vmem:[%s4876_s30 + $0x180] sm:$0xff] %vm1842_vm6, %v2369_v25  ;;  %3005 = vst.msk [vmem:[%s4876_s30 + $0x190] sm:$0xff] %vm1842_vm6, %v2667_v40 }
 0x338   : > { %v3141_v19 = vpop.f32.mrb[26].mxu0  ;;  %v3199_v56 = vpop.f32.mrb[26].mxu1 }
 0x339   : > { %v2322_v55 = vadd.f32 %v3141_v19, %v4867_v11  ;;  %v2620_v17 = vadd.f32 %v3199_v56, %v4867_v11  ;;  %v2316_v15 = vpop.f32.mrb[27].mxu0  ;;  %v2614_v28 = vpop.f32.mrb[27].mxu1 }
 0x33a   : > { %v2317_v31 = vadd.f32 %v4867_v11, %v2316_v15  ;;  %v2615_v1 = vadd.f32 %v4867_v11, %v2614_v28 }
 0x33b   : > { %v2372_v33 = vmax.f32 %v2322_v55, 0.0  ;;  %v2670_v13 = vmax.f32 %v2620_v17, 0.0 }
 0x33c   : > { %v2371_v14 = vmax.f32 %v2317_v31, 0.0  ;;  %v2669_v41 = vmax.f32 %v2615_v1, 0.0 }
 0x33d   : > { %2404 = vst.msk [vmem:[%s4876_s30 + $0x1a8] sm:$0xff] %vm1842_vm6, %v2372_v33  ;;  %3008 = vst.msk [vmem:[%s4876_s30 + $0x1b8] sm:$0xff] %vm1842_vm6, %v2670_v13 }
 0x33e   : > { %2403 = vst.msk [vmem:[%s4876_s30 + $0x1a0] sm:$0xff] %vm1842_vm6, %v2371_v14  ;;  %3007 = vst.msk [vmem:[%s4876_s30 + $0x1b0] sm:$0xff] %vm1842_vm6, %v2669_v41 }
 0x350   : > { %v3144_v29 = vpop.f32.mrb[28].mxu0  ;;  %v3202_v51 = vpop.f32.mrb[28].mxu1 }
 0x351   : > { %v2332_v2 = vadd.f32 %v3144_v29, %v4867_v11  ;;  %v2630_v58 = vadd.f32 %v3202_v51, %v4867_v11  ;;  %v2326_v61 = vpop.f32.mrb[29].mxu0  ;;  %v2624_v38 = vpop.f32.mrb[29].mxu1 }
 0x352   : > { %v2327_v0 = vadd.f32 %v4867_v11, %v2326_v61  ;;  %v2625_v60 = vadd.f32 %v4867_v11, %v2624_v38 }
 0x353   : > { %v2374_v8 = vmax.f32 %v2332_v2, 0.0  ;;  %v2672_v24 = vmax.f32 %v2630_v58, 0.0 }
 0x354   : > { %v2373_v35 = vmax.f32 %v2327_v0, 0.0  ;;  %v2671_v12 = vmax.f32 %v2625_v60, 0.0 }
 0x355   : > { %2406 = vst.msk [vmem:[%s4876_s30 + $0x1c8] sm:$0xff] %vm1842_vm6, %v2374_v8  ;;  %3010 = vst.msk [vmem:[%s4876_s30 + $0x1d8] sm:$0xff] %vm1842_vm6, %v2672_v24 }
 0x356   : > { %2405 = vst.msk [vmem:[%s4876_s30 + $0x1c0] sm:$0xff] %vm1842_vm6, %v2373_v35  ;;  %3009 = vst.msk [vmem:[%s4876_s30 + $0x1d0] sm:$0xff] %vm1842_vm6, %v2671_v12 }
 0x35d   : > { %v3147_v44 = vpop.f32.mrb[30].mxu0  ;;  %v3205_v36 = vpop.f32.mrb[30].mxu1 }
 0x35e   : > { %v2342_v42 = vadd.f32 %v3147_v44, %v4867_v11  ;;  %v2640_v18 = vadd.f32 %v3205_v36, %v4867_v11  ;;  %v2336_v3 = vpop.f32.mrb[31].mxu0  ;;  %v2634_v50 = vpop.f32.mrb[31].mxu1 }
 0x35f   : > { %v2337_v22 = vadd.f32 %v4867_v11, %v2336_v3  ;;  %v2635_v21 = vadd.f32 %v4867_v11, %v2634_v50 }
 0x360   : > { %v2376_v63 = vmax.f32 %v2342_v42, 0.0  ;;  %v2674_v10 = vmax.f32 %v2640_v18, 0.0 }
 0x361   : > { %v2375_v53 = vmax.f32 %v2337_v22, 0.0  ;;  %v2673_v45 = vmax.f32 %v2635_v21, 0.0 }
 0x362   : > { %2408 = vst.msk [vmem:[%s4876_s30 + $0x1e8] sm:$0xff] %vm1842_vm6, %v2376_v63  ;;  %3012 = vst.msk [vmem:[%s4876_s30 + $0x1f8] sm:$0xff] %vm1842_vm6, %v2674_v10 }
 0x363   : > { %2407 = vst.msk [vmem:[%s4876_s30 + $0x1e0] sm:$0xff] %vm1842_vm6, %v2375_v53  ;;  %3011 = vst.msk [vmem:[%s4876_s30 + $0x1f0] sm:$0xff] %vm1842_vm6, %v2673_v45 }
 0x364 PF: > { %s13_s14 = sadd.s32 1, %s3284_s14   ;;  %s5335_s12 = smov %s3280_s13 }
 0x365   : > { %p10_p5 = scmp.ge.s32.totalorder %s13_s14, 4   ;;  %s5336_s13 = smov %s5338_s15 }
 0x367   :  { %12 = sbr.rel (!%p10_p5) target bundleno = 2 (0x2), region = 67 }

</bundles_post_ra>
